<compile_context>
chip_gen: v7x
topology: tpu7x:2x2x1
jax: 0.10.0
libtpu: 0.0.40
codegen_flags: <defaults>
</compile_context>

<pallas_src>
import functools

import jax
import jax.numpy as jnp
from jax.experimental import pallas as pl
from jax.experimental.pallas import tpu as pltpu

BN_EPS = 1e-5
_LANE = 128        # lane tile (last dim)
_SUBLANE_BF16 = 16  # sublane tile for bf16 operands (second-to-last dim)
_VMEM_LIMIT = 32 * 1024 * 1024   # safe scoped-VMEM ceiling on v5e/v6e/v7x


# ----------------------------- small helpers -----------------------------
def _round_up(x, m):
    return -(-x // m) * m


def _pad2d(a, rows, cols):
    r, c = a.shape
    if r == rows and c == cols:
        return a
    return jnp.pad(a, ((0, rows - r), (0, cols - c)))   # zero fill (invariant!)


def _pick_m_tile(m, cap=512):
    """Largest tile (multiple of 16, <= cap) that divides m, preferring >= 2
    tiles so v7x can shard the 'parallel' M axis over its 2 TensorCores."""
    assert m % _SUBLANE_BF16 == 0, m
    best = None
    for t in (512, 256, 128, 64, 32, 16):
        if t <= cap and m % t == 0:
            if m // t >= 2:
                return t
            if best is None:
                best = t
    assert best is not None, f"no valid M tile for m={m}"
    return best


def _pick_batch_tile(b):
    """Samples per fused-tail block: the whole (tiny) batch in one block, or a
    multiple of 8 up to 32 so multi-block specs stay (8,128)-aligned and the
    largest GEMM in the block reaches 512 rows at big batch sizes."""
    if b % 8 == 0:
        for t in (32, 16, 8):
            if b % t == 0:
                return t
    return b


# ----------------------------- conv GEMM (conv1 / conv2) -----------------------------
def _conv_gemm_kernel(a_ref, w_ref, scale_ref, shift_ref, o_ref):
    """o = BN(ReLU(A @ W)) with folded-BN affine; whole K in one block."""
    acc = jnp.dot(a_ref[...], w_ref[...], preferred_element_type=jnp.float32)
    acc = jnp.maximum(acc, 0.0) * scale_ref[...] + shift_ref[...]
    o_ref[...] = acc.astype(o_ref.dtype)


def _conv_gemm(patches, wmat, scale, shift, *, out_dtype=jnp.bfloat16):
    """Tiled over M only (no K grid, no accumulator scratch)."""
    m, k = patches.shape
    k2, n = wmat.shape
    assert k == k2 and k % _LANE == 0 and n % _LANE == 0
    assert m % _SUBLANE_BF16 == 0
    tm = _pick_m_tile(m)
    n_m = m // tm
    # full-K blocks must stay comfortably inside VMEM (re-introduce K tiling
    # only if this ever trips — not at this architecture's shapes).
    assert (tm * k + k * n) * 2 <= 8 * 1024 * 1024

    cost = pl.CostEstimate(
        flops=2 * m * k * n,
        transcendentals=0,
        # A once + W (and affine) refetched per M tile + output.
        bytes_accessed=m * k * 2 + n_m * (k * n * 2 + 2 * n * 4)
        + m * n * jnp.dtype(out_dtype).itemsize)

    return pl.pallas_call(
        _conv_gemm_kernel,
        out_shape=jax.ShapeDtypeStruct((m, n), out_dtype),
        grid=(n_m,),
        in_specs=[
            pl.BlockSpec((tm, k), lambda i: (i, 0)),
            pl.BlockSpec((k, n), lambda i: (0, 0)),
            pl.BlockSpec((1, n), lambda i: (0, 0)),
            pl.BlockSpec((1, n), lambda i: (0, 0)),
        ],
        out_specs=pl.BlockSpec((tm, n), lambda i: (i, 0)),
        compiler_params=pltpu.CompilerParams(
            dimension_semantics=("parallel",),
            vmem_limit_bytes=_VMEM_LIMIT),
        cost_estimate=cost,
    )(patches, wmat, scale, shift)


# ----------------------------- fused tail (conv3..5 + MLP) -----------------------------
def _tail_kernel(p3_ref, w3_ref, s3_ref, t3_ref, w4_ref, s4_ref, t4_ref,
                 w5_ref, s5_ref, t5_ref, w6_ref, b6_ref, w7_ref, b7_ref,
                 o_ref, *, tb):
    """conv3 -> conv4 -> conv5 -> fc1 -> ReLU -> fc2, everything in VMEM.

    Row layout of the conv3 patch block (and of every intermediate conv
    activation) is position-major: row = spatial_pos * tb + sample.  This makes
    every in-kernel im2col gather a *contiguous* row slice.
    """
    f32, bf16 = jnp.float32, jnp.bfloat16
    cp = w3_ref.shape[1]                       # padded channel width (128)

    # conv3: GEMM + ReLU + folded BN   (8x8 -> 4x4 spatial)
    a3 = jnp.dot(p3_ref[0], w3_ref[...], preferred_element_type=f32)
    a3 = (jnp.maximum(a3, 0.0) * s3_ref[...] + t3_ref[...]).astype(bf16)  # (16*tb, cp)

    # conv4: in-kernel im2col (4x4 -> 2x2, k3 s2 p1) + GEMM + ReLU + BN.
    zero = jnp.zeros((tb, cp), bf16)
    pos_rows = []
    for ho in range(2):
        for wo in range(2):
            taps = []
            for di in range(3):
                for dj in range(3):
                    h, w = 2 * ho + di - 1, 2 * wo + dj - 1
                    if 0 <= h < 4 and 0 <= w < 4:
                        t = h * 4 + w
                        taps.append(a3[t * tb:(t + 1) * tb, :])
                    else:
                        taps.append(zero)
            pos_rows.append(jnp.concatenate(taps, axis=-1))      # (tb, 9*cp)
    p4 = jnp.concatenate(pos_rows, axis=0)                       # (4*tb, 9*cp)
    a4 = jnp.dot(p4, w4_ref[...], preferred_element_type=f32)
    a4 = (jnp.maximum(a4, 0.0) * s4_ref[...] + t4_ref[...]).astype(bf16)  # (4*tb, cp)

    # conv5 (2x2 -> 1x1, k3 s2 p1): only kernel taps (1..2, 1..2) touch real
    # pixels, so it is exactly a Linear on the (h, w, c) flatten; a4 rows are
    # already position-major, so the flatten is a lane concat of row blocks.
    p5 = jnp.concatenate([a4[p * tb:(p + 1) * tb, :] for p in range(4)], axis=-1)
    a5 = jnp.dot(p5, w5_ref[...], preferred_element_type=f32)
    a5 = (jnp.maximum(a5, 0.0) * s5_ref[...] + t5_ref[...]).astype(bf16)  # (tb, cp)

    # fc1 -> ReLU -> fc2 (hidden activation never leaves VMEM)
    h1 = jnp.dot(a5, w6_ref[...], preferred_element_type=f32) + b6_ref[...]
    h1 = jnp.maximum(h1, 0.0).astype(bf16)
    out = jnp.dot(h1, w7_ref[...], preferred_element_type=f32) + b7_ref[...]
    o_ref[0] = out.astype(o_ref.dtype)


_TAIL_NAMES = ("w3", "s3", "t3", "w4", "s4", "t4",
               "w5", "s5", "t5", "w6", "b6", "w7", "b7")


def _fused_tail(p3, tail, *, tb, rep_pad):
    """One pallas_call for conv3+conv4+conv5+fc1+fc2; grid over batch tiles."""
    nb, m3, k3 = p3.shape
    assert m3 == tb * 16 and k3 % _LANE == 0
    cp = tail["w3"].shape[1]
    hp = tail["w6"].shape[1]
    wbytes = sum(int(tail[n].size) * tail[n].dtype.itemsize for n in _TAIL_NAMES)
    assert wbytes <= 4 * 1024 * 1024        # resident weights; fine on v7x too

    flops = 2 * nb * tb * (16 * k3 * cp + 4 * k3 * cp + 4 * cp * cp
                           + cp * hp + hp * rep_pad)
    cost = pl.CostEstimate(
        flops=flops, transcendentals=0,
        bytes_accessed=int(p3.size) * 2 + nb * wbytes + nb * tb * rep_pad * 4)

    return pl.pallas_call(
        functools.partial(_tail_kernel, tb=tb),
        out_shape=jax.ShapeDtypeStruct((nb, tb, rep_pad), jnp.float32),
        grid=(nb,),
        in_specs=[pl.BlockSpec((1, m3, k3), lambda i: (i, 0, 0))]
        + [pl.BlockSpec(tail[n].shape, lambda i: (0, 0)) for n in _TAIL_NAMES],
        out_specs=pl.BlockSpec((1, tb, rep_pad), lambda i: (i, 0, 0)),
        compiler_params=pltpu.CompilerParams(
            dimension_semantics=("parallel",),
            vmem_limit_bytes=_VMEM_LIMIT),
        cost_estimate=cost,
    )(p3, *(tail[n] for n in _TAIL_NAMES))


# ----------------------------- conv glue (NHWC, XLA side) -----------------------------
def _im2col_nhwc(x, kh, kw, stride, padding):
    """x: (N, H, W, C) -> (N, Ho, Wo, kh*kw*C); K order is (kh, kw, C)."""
    n, h, w, c = x.shape
    xp = jnp.pad(x, ((0, 0), (padding, padding), (padding, padding), (0, 0)))
    ho = (h + 2 * padding - kh) // stride + 1
    wo = (w + 2 * padding - kw) // stride + 1
    cols = []
    for i in range(kh):
        for j in range(kw):
            cols.append(xp[:, i:i + stride * ho:stride,
                           j:j + stride * wo:stride, :])
    return jnp.concatenate(cols, axis=-1), ho, wo


# ----------------------------- model -----------------------------
# arch 'MAGICALCNN', width w = 2
_ARCH = [
    dict(out_dim=32, kernel_size=5, stride=1, padding=2),
    dict(out_dim=64, kernel_size=3, stride=2, padding=1),
    dict(out_dim=64, kernel_size=3, stride=2, padding=1),
    dict(out_dim=64, kernel_size=3, stride=2, padding=1),
    dict(out_dim=64, kernel_size=3, stride=2, padding=1),
]
_WIDTH = 2


def init_raw_params(key, in_channels, spatial, representation_dim):
    """PyTorch-layout params (Conv2d OIHW, BatchNorm2d stats, Linear (out,in))."""
    raw = {"conv": [], "fc": [], "meta": {}}
    in_dim, h = in_channels, spatial
    for layer in _ARCH:
        out_dim = layer["out_dim"] * _WIDTH
        ksz = layer["kernel_size"]
        key, wk = jax.random.split(key)
        fan_in = in_dim * ksz * ksz
        w = jax.random.normal(wk, (out_dim, in_dim, ksz, ksz), jnp.float32) * \
            jnp.sqrt(2.0 / fan_in)
        raw["conv"].append(dict(
            w=w,
            gamma=jnp.ones((out_dim,), jnp.float32),
            beta=jnp.zeros((out_dim,), jnp.float32),
            mean=jnp.zeros((out_dim,), jnp.float32),
            var=jnp.ones((out_dim,), jnp.float32),
            kernel_size=ksz, stride=layer["stride"], padding=layer["padding"]))
        in_dim = out_dim
        h = (h + 2 * layer["padding"] - ksz) // layer["stride"] + 1

    fc_in = in_dim * h * h
    hidden = 128 * _WIDTH
    key, k1, k2 = jax.random.split(key, 3)
    raw["fc"].append(dict(
        w=jax.random.normal(k1, (hidden, fc_in), jnp.float32) * jnp.sqrt(1.0 / fc_in),
        b=jnp.zeros((hidden,), jnp.float32)))
    raw["fc"].append(dict(
        w=jax.random.normal(k2, (representation_dim, hidden), jnp.float32) *
        jnp.sqrt(1.0 / hidden),
        b=jnp.zeros((representation_dim,), jnp.float32)))
    raw["meta"] = dict(final_spatial=h, final_channels=in_dim,
                       hidden=hidden, representation_dim=representation_dim)
    return raw


def prepare_params(raw):
    """One-time weight prep hoisted out of the forward pass:
      * fold eval-mode BatchNorm into a per-channel (scale, shift) affine,
      * repack conv weights (O,C,kh,kw) -> (kh*kw*Cp, O) matching NHWC im2col
        with the *padded* channel count Cp=128 (channels stay 128-wide across
        layers -> no slice/repad round trips),
      * reduce conv5 (2x2 input) to a Linear on the (h,w,c) flatten,
      * pad K/N to 128 multiples, cast weights bf16, keep affines/biases f32.
    """
    meta = raw["meta"]
    assert meta["final_spatial"] == 1, "fused tail assumes 16x16 input images"

    def bn_affine(p, n_pad):
        inv_std = 1.0 / jnp.sqrt(p["var"] + BN_EPS)
        scale = p["gamma"] * inv_std
        shift = p["beta"] - p["mean"] * scale
        o = scale.shape[0]
        return (_pad2d(scale.reshape(1, o), 1, n_pad).astype(jnp.float32),
                _pad2d(shift.reshape(1, o), 1, n_pad).astype(jnp.float32))

    def repack(w, c_pad):
        # (O, C, kh, kw) -> (kh*kw*c_pad, O) with K order (kh, kw, c).
        o, c, kh, kw = w.shape
        wt = jnp.transpose(w, (2, 3, 1, 0))
        if c_pad > c:
            wt = jnp.pad(wt, ((0, 0), (0, 0), (0, c_pad - c), (0, 0)))
        return wt.reshape(kh * kw * c_pad, o)

    params = {"conv": [], "tail": {}}

    # conv1: true-C repack (trailing K pad 100->128); output channels 64->128
    # padded with zero weight cols + zero affine, kept padded downstream.
    p0 = raw["conv"][0]
    w0 = repack(p0["w"], p0["w"].shape[1])
    k0p, n0p = _round_up(w0.shape[0], _LANE), _round_up(w0.shape[1], _LANE)
    s0, t0 = bn_affine(p0, n0p)
    params["conv"].append(dict(w=_pad2d(w0, k0p, n0p).astype(jnp.bfloat16),
                               s=s0, t=t0))

    # conv2: input channels arrive 128-padded -> repack with c_pad=128.
    p1 = raw["conv"][1]
    w1 = repack(p1["w"], _LANE)
    n1p = _round_up(w1.shape[1], _LANE)
    s1, t1 = bn_affine(p1, n1p)
    params["conv"].append(dict(w=_pad2d(w1, w1.shape[0], n1p).astype(jnp.bfloat16),
                               s=s1, t=t1))

    tail = {}
    for idx, name in ((2, "3"), (3, "4")):       # conv3 / conv4: (1152, 128)
        p = raw["conv"][idx]
        w = repack(p["w"], _LANE)
        npad = _round_up(w.shape[1], _LANE)
        s, t = bn_affine(p, npad)
        tail["w" + name] = _pad2d(w, w.shape[0], npad).astype(jnp.bfloat16)
        tail["s" + name], tail["t" + name] = s, t

    # conv5 on a 2x2 input (k3 s2 p1) only uses taps (di,dj) in {1,2}^2 ->
    # exactly a Linear on the (h, w, c) flatten of its input.
    p = raw["conv"][4]
    o5 = p["w"].shape[0]
    w5 = repack(p["w"], _LANE).reshape(3, 3, _LANE, o5)
    w5 = jnp.concatenate([w5[1, 1], w5[1, 2], w5[2, 1], w5[2, 2]], axis=0)
    n5p = _round_up(o5, _LANE)
    s5, t5 = bn_affine(p, n5p)
    tail["w5"] = _pad2d(w5, w5.shape[0], n5p).astype(jnp.bfloat16)
    tail["s5"], tail["t5"] = s5, t5

    hidden, rep = meta["hidden"], meta["representation_dim"]
    fc_in = meta["final_channels"]              # final spatial is 1x1
    hp, rep_pad = _round_up(hidden, _LANE), _round_up(rep, _LANE)
    # NCHW and NHWC flatten coincide at 1x1 final spatial.
    tail["w6"] = _pad2d(raw["fc"][0]["w"].T, n5p, hp).astype(jnp.bfloat16)
    tail["b6"] = _pad2d(raw["fc"][0]["b"].reshape(1, hidden), 1, hp).astype(jnp.float32)
    tail["w7"] = _pad2d(raw["fc"][1]["w"].T, hp, rep_pad).astype(jnp.bfloat16)
    tail["b7"] = _pad2d(raw["fc"][1]["b"].reshape(1, rep), 1, rep_pad).astype(jnp.float32)
    params["tail"] = tail

    cfg = dict(representation_dim=rep, rep_pad=rep_pad)
    return params, cfg


def magical_cnn_forward(params, x, *, cfg):
    """x: (N, C, 16, 16) float32 in [0, 1] -> (N, representation_dim) f32."""
    b = x.shape[0]
    conv = params["conv"]
    x = jnp.transpose(x, (0, 2, 3, 1)).astype(jnp.bfloat16)     # NCHW -> NHWC

    # conv1 (k5 s1 p2): XLA im2col + one full-K GEMM(+ReLU+BN) kernel.
    p1, h1, w1 = _im2col_nhwc(x, 5, 5, 1, 2)
    p1 = p1.reshape(b * h1 * w1, -1)
    p1 = _pad2d(p1, p1.shape[0], conv[0]["w"].shape[0])   # trailing K pad only
    a1 = _conv_gemm(p1, conv[0]["w"], conv[0]["s"], conv[0]["t"])
    a1 = a1.reshape(b, h1, w1, _LANE)           # channels stay 128-padded

    # conv2 (k3 s2 p1): no pads, no slices (padded channels carried through).
    p2, h2, w2 = _im2col_nhwc(a1, 3, 3, 2, 1)
    a2 = _conv_gemm(p2.reshape(b * h2 * w2, -1),
                    conv[1]["w"], conv[1]["s"], conv[1]["t"])
    a2 = a2.reshape(b, h2, w2, _LANE)

    # conv3 patches; conv3+conv4+conv5+fc1+fc2 run fused in ONE kernel with all
    # weights VMEM-resident and every intermediate activation in VMEM.
    p3, h3, w3 = _im2col_nhwc(a2, 3, 3, 2, 1)
    assert (h1, h2, h3, w3) == (16, 8, 4, 4), (h1, h2, h3, w3)
    tb = _pick_batch_tile(b)
    nb = b // tb
    k3 = p3.shape[-1]
    # position-major rows inside each batch tile: row = pos*tb + sample
    p3 = p3.reshape(nb, tb, h3 * w3, k3).transpose(0, 2, 1, 3).reshape(
        nb, h3 * w3 * tb, k3)
    out = _fused_tail(p3, params["tail"], tb=tb, rep_pad=cfg["rep_pad"])
    return out.reshape(b, cfg["rep_pad"])[:, :cfg["representation_dim"]]


# ----------------------------- demo -----------------------------
if __name__ == "__main__":
    key = jax.random.PRNGKey(0)
    key, xk = jax.random.split(key)
    batch, channels, spatial, rep_dim = 2, 4, 16, 64
    x = jax.random.uniform(xk, (batch, channels, spatial, spatial), jnp.float32)

    raw = init_raw_params(key, channels, spatial, rep_dim)
    params, cfg = prepare_params(raw)        # one-time weight prep (hoisted)

    forward = jax.jit(functools.partial(magical_cnn_forward, cfg=cfg))
    out = forward(params, x)
    out = jax.block_until_ready(out)

    assert out.shape == (batch, rep_dim), out.shape
    assert bool(jnp.all(jnp.isfinite(out)))
    print("KERNEL_OK")
</pallas_src>

<mosaic_0001>
module attributes {stable_mosaic.version = 11 : i64} {
  func.func @_conv_gemm_kernel(%arg0: i32, %arg1: memref<256x128xbf16, #tpu.memory_space<vmem>>, %arg2: memref<128x128xbf16, #tpu.memory_space<vmem>>, %arg3: memref<1x128xf32, #tpu.memory_space<vmem>>, %arg4: memref<1x128xf32, #tpu.memory_space<vmem>>, %arg5: memref<256x128xbf16, #tpu.memory_space<vmem>>) attributes {dimension_semantics = [#tpu.dimension_semantics<parallel>], iteration_bounds = array<i64: 2>, scalar_prefetch = 0 : i64, scratch_operands = 0 : i64, tpu.core_type = #tpu.core_type<tc>, window_params = [{transform_indices = @transform_0, window_bounds = array<i64: 256, 128>}, {pipeline_mode = #tpu.pipeline_mode<synchronous>, transform_indices = @transform_1, window_bounds = array<i64: 128, 128>}, {pipeline_mode = #tpu.pipeline_mode<synchronous>, transform_indices = @transform_2, window_bounds = array<i64: 1, 128>}, {pipeline_mode = #tpu.pipeline_mode<synchronous>, transform_indices = @transform_3, window_bounds = array<i64: 1, 128>}, {transform_indices = @transform_4, window_bounds = array<i64: 256, 128>}]} {
    %c0 = arith.constant 0 : index
    %c0_0 = arith.constant 0 : index
    %0 = vector.load %arg1[%c0, %c0_0] : memref<256x128xbf16, #tpu.memory_space<vmem>>, vector<256x128xbf16>
    %c0_1 = arith.constant 0 : index
    %c0_2 = arith.constant 0 : index
    %1 = vector.load %arg2[%c0_1, %c0_2] : memref<128x128xbf16, #tpu.memory_space<vmem>>, vector<128x128xbf16>
    %cst = arith.constant dense<0.000000e+00> : vector<256x128xf32>
    %2 = tpu.matmul %0, %1, %cst {dimension_numbers = #tpu.dot_dimension_numbers<[1], [0], [0], [1], [0, 0, 1, 1], [], []>} : vector<256x128xbf16>, vector<128x128xbf16>, vector<256x128xf32> -> vector<256x128xf32>
    %cst_3 = arith.constant 0.000000e+00 : f32
    %3 = vector.broadcast %cst_3 : f32 to vector<256x128xf32>
    %4 = arith.maximumf %2, %3 : vector<256x128xf32>
    %c0_4 = arith.constant 0 : index
    %c0_5 = arith.constant 0 : index
    %5 = vector.load %arg3[%c0_4, %c0_5] : memref<1x128xf32, #tpu.memory_space<vmem>>, vector<1x128xf32>
    %6 = vector.broadcast %5 : vector<1x128xf32> to vector<256x128xf32>
    %7 = arith.mulf %4, %6 : vector<256x128xf32>
    %c0_6 = arith.constant 0 : index
    %c0_7 = arith.constant 0 : index
    %8 = vector.load %arg4[%c0_6, %c0_7] : memref<1x128xf32, #tpu.memory_space<vmem>>, vector<1x128xf32>
    %9 = vector.broadcast %8 : vector<1x128xf32> to vector<256x128xf32>
    %10 = arith.addf %7, %9 : vector<256x128xf32>
    %11 = arith.truncf %10 : vector<256x128xf32> to vector<256x128xbf16>
    %c0_8 = arith.constant 0 : index
    %c0_9 = arith.constant 0 : index
    %12 = vector.load %arg5[%c0_8, %c0_9] : memref<256x128xbf16, #tpu.memory_space<vmem>>, vector<256x128xbf16>
    tpu.vector_store %arg5[%c0_8, %c0_9], %11 {strides = array<i32>} : memref<256x128xbf16, #tpu.memory_space<vmem>>, vector<256x128xbf16>,
    return
  }
  func.func @transform_0(%arg0: i32) -> (i32, i32) {
    %c0_i32 = arith.constant 0 : i32
    %c0_i32_0 = arith.constant 0 : i32
    return %arg0, %c0_i32 : i32, i32
  }
  func.func @transform_1(%arg0: i32) -> (i32, i32) {
    %c0_i32 = arith.constant 0 : i32
    %c0_i32_0 = arith.constant 0 : i32
    %c0_i32_1 = arith.constant 0 : i32
    return %c0_i32, %c0_i32_0 : i32, i32
  }
  func.func @transform_2(%arg0: i32) -> (i32, i32) {
    %c0_i32 = arith.constant 0 : i32
    %c0_i32_0 = arith.constant 0 : i32
    %c0_i32_1 = arith.constant 0 : i32
    return %c0_i32, %c0_i32_0 : i32, i32
  }
  func.func @transform_3(%arg0: i32) -> (i32, i32) {
    %c0_i32 = arith.constant 0 : i32
    %c0_i32_0 = arith.constant 0 : i32
    %c0_i32_1 = arith.constant 0 : i32
    return %c0_i32, %c0_i32_0 : i32, i32
  }
  func.func @transform_4(%arg0: i32) -> (i32, i32) {
    %c0_i32 = arith.constant 0 : i32
    %c0_i32_0 = arith.constant 0 : i32
    return %arg0, %c0_i32 : i32, i32
  }
}

module attributes {stable_mosaic.version = 11 : i64} {
  func.func @_conv_gemm_kernel(%arg0: i32, %arg1: memref<64x1152xbf16, #tpu.memory_space<vmem>>, %arg2: memref<1152x128xbf16, #tpu.memory_space<vmem>>, %arg3: memref<1x128xf32, #tpu.memory_space<vmem>>, %arg4: memref<1x128xf32, #tpu.memory_space<vmem>>, %arg5: memref<64x128xbf16, #tpu.memory_space<vmem>>) attributes {dimension_semantics = [#tpu.dimension_semantics<parallel>], iteration_bounds = array<i64: 2>, scalar_prefetch = 0 : i64, scratch_operands = 0 : i64, tpu.core_type = #tpu.core_type<tc>, window_params = [{transform_indices = @transform_0, window_bounds = array<i64: 64, 1152>}, {pipeline_mode = #tpu.pipeline_mode<synchronous>, transform_indices = @transform_1, window_bounds = array<i64: 1152, 128>}, {pipeline_mode = #tpu.pipeline_mode<synchronous>, transform_indices = @transform_2, window_bounds = array<i64: 1, 128>}, {pipeline_mode = #tpu.pipeline_mode<synchronous>, transform_indices = @transform_3, window_bounds = array<i64: 1, 128>}, {transform_indices = @transform_4, window_bounds = array<i64: 64, 128>}]} {
    %c0 = arith.constant 0 : index
    %c0_0 = arith.constant 0 : index
    %0 = vector.load %arg1[%c0, %c0_0] : memref<64x1152xbf16, #tpu.memory_space<vmem>>, vector<64x1152xbf16>
    %c0_1 = arith.constant 0 : index
    %c0_2 = arith.constant 0 : index
    %1 = vector.load %arg2[%c0_1, %c0_2] : memref<1152x128xbf16, #tpu.memory_space<vmem>>, vector<1152x128xbf16>
    %cst = arith.constant dense<0.000000e+00> : vector<64x128xf32>
    %2 = tpu.matmul %0, %1, %cst {dimension_numbers = #tpu.dot_dimension_numbers<[1], [0], [0], [1], [0, 0, 1, 1], [], []>} : vector<64x1152xbf16>, vector<1152x128xbf16>, vector<64x128xf32> -> vector<64x128xf32>
    %cst_3 = arith.constant 0.000000e+00 : f32
    %3 = vector.broadcast %cst_3 : f32 to vector<64x128xf32>
    %4 = arith.maximumf %2, %3 : vector<64x128xf32>
    %c0_4 = arith.constant 0 : index
    %c0_5 = arith.constant 0 : index
    %5 = vector.load %arg3[%c0_4, %c0_5] : memref<1x128xf32, #tpu.memory_space<vmem>>, vector<1x128xf32>
    %6 = vector.broadcast %5 : vector<1x128xf32> to vector<64x128xf32>
    %7 = arith.mulf %4, %6 : vector<64x128xf32>
    %c0_6 = arith.constant 0 : index
    %c0_7 = arith.constant 0 : index
    %8 = vector.load %arg4[%c0_6, %c0_7] : memref<1x128xf32, #tpu.memory_space<vmem>>, vector<1x128xf32>
    %9 = vector.broadcast %8 : vector<1x128xf32> to vector<64x128xf32>
    %10 = arith.addf %7, %9 : vector<64x128xf32>
    %11 = arith.truncf %10 : vector<64x128xf32> to vector<64x128xbf16>
    %c0_8 = arith.constant 0 : index
    %c0_9 = arith.constant 0 : index
    %12 = vector.load %arg5[%c0_8, %c0_9] : memref<64x128xbf16, #tpu.memory_space<vmem>>, vector<64x128xbf16>
    tpu.vector_store %arg5[%c0_8, %c0_9], %11 {strides = array<i32>} : memref<64x128xbf16, #tpu.memory_space<vmem>>, vector<64x128xbf16>,
    return
  }
  func.func @transform_0(%arg0: i32) -> (i32, i32) {
    %c0_i32 = arith.constant 0 : i32
    %c0_i32_0 = arith.constant 0 : i32
    return %arg0, %c0_i32 : i32, i32
  }
  func.func @transform_1(%arg0: i32) -> (i32, i32) {
    %c0_i32 = arith.constant 0 : i32
    %c0_i32_0 = arith.constant 0 : i32
    %c0_i32_1 = arith.constant 0 : i32
    return %c0_i32, %c0_i32_0 : i32, i32
  }
  func.func @transform_2(%arg0: i32) -> (i32, i32) {
    %c0_i32 = arith.constant 0 : i32
    %c0_i32_0 = arith.constant 0 : i32
    %c0_i32_1 = arith.constant 0 : i32
    return %c0_i32, %c0_i32_0 : i32, i32
  }
  func.func @transform_3(%arg0: i32) -> (i32, i32) {
    %c0_i32 = arith.constant 0 : i32
    %c0_i32_0 = arith.constant 0 : i32
    %c0_i32_1 = arith.constant 0 : i32
    return %c0_i32, %c0_i32_0 : i32, i32
  }
  func.func @transform_4(%arg0: i32) -> (i32, i32) {
    %c0_i32 = arith.constant 0 : i32
    %c0_i32_0 = arith.constant 0 : i32
    return %arg0, %c0_i32 : i32, i32
  }
}

module attributes {stable_mosaic.version = 11 : i64} {
  func.func @_tail_kernel(%arg0: i32, %arg1: memref<1x32x1152xbf16, #tpu.memory_space<vmem>>, %arg2: memref<1152x128xbf16, #tpu.memory_space<vmem>>, %arg3: memref<1x128xf32, #tpu.memory_space<vmem>>, %arg4: memref<1x128xf32, #tpu.memory_space<vmem>>, %arg5: memref<1152x128xbf16, #tpu.memory_space<vmem>>, %arg6: memref<1x128xf32, #tpu.memory_space<vmem>>, %arg7: memref<1x128xf32, #tpu.memory_space<vmem>>, %arg8: memref<512x128xbf16, #tpu.memory_space<vmem>>, %arg9: memref<1x128xf32, #tpu.memory_space<vmem>>, %arg10: memref<1x128xf32, #tpu.memory_space<vmem>>, %arg11: memref<128x256xbf16, #tpu.memory_space<vmem>>, %arg12: memref<1x256xf32, #tpu.memory_space<vmem>>, %arg13: memref<256x128xbf16, #tpu.memory_space<vmem>>, %arg14: memref<1x128xf32, #tpu.memory_space<vmem>>, %arg15: memref<1x2x128xf32, #tpu.memory_space<vmem>>) attributes {dimension_semantics = [#tpu.dimension_semantics<parallel>], iteration_bounds = array<i64: 1>, scalar_prefetch = 0 : i64, scratch_operands = 0 : i64, tpu.core_type = #tpu.core_type<tc>, window_params = [{transform_indices = @transform_0, window_bounds = array<i64: 1, 32, 1152>}, {pipeline_mode = #tpu.pipeline_mode<synchronous>, transform_indices = @transform_1, window_bounds = array<i64: 1152, 128>}, {pipeline_mode = #tpu.pipeline_mode<synchronous>, transform_indices = @transform_2, window_bounds = array<i64: 1, 128>}, {pipeline_mode = #tpu.pipeline_mode<synchronous>, transform_indices = @transform_3, window_bounds = array<i64: 1, 128>}, {pipeline_mode = #tpu.pipeline_mode<synchronous>, transform_indices = @transform_4, window_bounds = array<i64: 1152, 128>}, {pipeline_mode = #tpu.pipeline_mode<synchronous>, transform_indices = @transform_5, window_bounds = array<i64: 1, 128>}, {pipeline_mode = #tpu.pipeline_mode<synchronous>, transform_indices = @transform_6, window_bounds = array<i64: 1, 128>}, {pipeline_mode = #tpu.pipeline_mode<synchronous>, transform_indices = @transform_7, window_bounds = array<i64: 512, 128>}, {pipeline_mode = #tpu.pipeline_mode<synchronous>, transform_indices = @transform_8, window_bounds = array<i64: 1, 128>}, {pipeline_mode = #tpu.pipeline_mode<synchronous>, transform_indices = @transform_9, window_bounds = array<i64: 1, 128>}, {pipeline_mode = #tpu.pipeline_mode<synchronous>, transform_indices = @transform_10, window_bounds = array<i64: 128, 256>}, {pipeline_mode = #tpu.pipeline_mode<synchronous>, transform_indices = @transform_11, window_bounds = array<i64: 1, 256>}, {pipeline_mode = #tpu.pipeline_mode<synchronous>, transform_indices = @transform_12, window_bounds = array<i64: 256, 128>}, {pipeline_mode = #tpu.pipeline_mode<synchronous>, transform_indices = @transform_13, window_bounds = array<i64: 1, 128>}, {transform_indices = @transform_14, window_bounds = array<i64: 1, 2, 128>}]} {
    %c0 = arith.constant 0 : index
    %c0_0 = arith.constant 0 : index
    %c0_1 = arith.constant 0 : index
    %0 = vector.load %arg1[%c0, %c0_0, %c0_1] : memref<1x32x1152xbf16, #tpu.memory_space<vmem>>, vector<1x32x1152xbf16>
    %1 = vector.shape_cast %0 : vector<1x32x1152xbf16> to vector<32x1152xbf16>
    %c0_2 = arith.constant 0 : index
    %c0_3 = arith.constant 0 : index
    %2 = vector.load %arg2[%c0_2, %c0_3] : memref<1152x128xbf16, #tpu.memory_space<vmem>>, vector<1152x128xbf16>
    %cst = arith.constant dense<0.000000e+00> : vector<32x128xf32>
    %3 = tpu.matmul %1, %2, %cst {dimension_numbers = #tpu.dot_dimension_numbers<[1], [0], [0], [1], [0, 0, 1, 1], [], []>} : vector<32x1152xbf16>, vector<1152x128xbf16>, vector<32x128xf32> -> vector<32x128xf32>
    %cst_4 = arith.constant 0.000000e+00 : f32
    %4 = vector.broadcast %cst_4 : f32 to vector<32x128xf32>
    %5 = arith.maximumf %3, %4 : vector<32x128xf32>
    %c0_5 = arith.constant 0 : index
    %c0_6 = arith.constant 0 : index
    %6 = vector.load %arg3[%c0_5, %c0_6] : memref<1x128xf32, #tpu.memory_space<vmem>>, vector<1x128xf32>
    %7 = vector.broadcast %6 : vector<1x128xf32> to vector<32x128xf32>
    %8 = arith.mulf %5, %7 : vector<32x128xf32>
    %c0_7 = arith.constant 0 : index
    %c0_8 = arith.constant 0 : index
    %9 = vector.load %arg4[%c0_7, %c0_8] : memref<1x128xf32, #tpu.memory_space<vmem>>, vector<1x128xf32>
    %10 = vector.broadcast %9 : vector<1x128xf32> to vector<32x128xf32>
    %11 = arith.addf %8, %10 : vector<32x128xf32>
    %12 = arith.truncf %11 : vector<32x128xf32> to vector<32x128xbf16>
    %cst_9 = arith.constant 0.000000e+00 : bf16
    %13 = vector.broadcast %cst_9 : bf16 to vector<2x128xbf16>
    %14 = vector.extract_strided_slice %12 {offsets = [0, 0], sizes = [2, 128], strides = [1, 1]} : vector<32x128xbf16> to vector<2x128xbf16>
    %15 = vector.extract_strided_slice %12 {offsets = [2, 0], sizes = [2, 128], strides = [1, 1]} : vector<32x128xbf16> to vector<2x128xbf16>
    %16 = vector.extract_strided_slice %12 {offsets = [8, 0], sizes = [2, 128], strides = [1, 1]} : vector<32x128xbf16> to vector<2x128xbf16>
    %17 = vector.extract_strided_slice %12 {offsets = [10, 0], sizes = [2, 128], strides = [1, 1]} : vector<32x128xbf16> to vector<2x128xbf16>
    %18 = tpu.concatenate %13, %13, %13, %13, %14, %15, %13, %16, %17 in 1 : vector<2x128xbf16>, vector<2x128xbf16>, vector<2x128xbf16>, vector<2x128xbf16>, vector<2x128xbf16>, vector<2x128xbf16>, vector<2x128xbf16>, vector<2x128xbf16>, vector<2x128xbf16> -> vector<2x1152xbf16>
    %19 = vector.extract_strided_slice %12 {offsets = [2, 0], sizes = [2, 128], strides = [1, 1]} : vector<32x128xbf16> to vector<2x128xbf16>
    %20 = vector.extract_strided_slice %12 {offsets = [4, 0], sizes = [2, 128], strides = [1, 1]} : vector<32x128xbf16> to vector<2x128xbf16>
    %21 = vector.extract_strided_slice %12 {offsets = [6, 0], sizes = [2, 128], strides = [1, 1]} : vector<32x128xbf16> to vector<2x128xbf16>
    %22 = vector.extract_strided_slice %12 {offsets = [10, 0], sizes = [2, 128], strides = [1, 1]} : vector<32x128xbf16> to vector<2x128xbf16>
    %23 = vector.extract_strided_slice %12 {offsets = [12, 0], sizes = [2, 128], strides = [1, 1]} : vector<32x128xbf16> to vector<2x128xbf16>
    %24 = vector.extract_strided_slice %12 {offsets = [14, 0], sizes = [2, 128], strides = [1, 1]} : vector<32x128xbf16> to vector<2x128xbf16>
    %25 = tpu.concatenate %13, %13, %13, %19, %20, %21, %22, %23, %24 in 1 : vector<2x128xbf16>, vector<2x128xbf16>, vector<2x128xbf16>, vector<2x128xbf16>, vector<2x128xbf16>, vector<2x128xbf16>, vector<2x128xbf16>, vector<2x128xbf16>, vector<2x128xbf16> -> vector<2x1152xbf16>
    %26 = vector.extract_strided_slice %12 {offsets = [8, 0], sizes = [2, 128], strides = [1, 1]} : vector<32x128xbf16> to vector<2x128xbf16>
    %27 = vector.extract_strided_slice %12 {offsets = [10, 0], sizes = [2, 128], strides = [1, 1]} : vector<32x128xbf16> to vector<2x128xbf16>
    %28 = vector.extract_strided_slice %12 {offsets = [16, 0], sizes = [2, 128], strides = [1, 1]} : vector<32x128xbf16> to vector<2x128xbf16>
    %29 = vector.extract_strided_slice %12 {offsets = [18, 0], sizes = [2, 128], strides = [1, 1]} : vector<32x128xbf16> to vector<2x128xbf16>
    %30 = vector.extract_strided_slice %12 {offsets = [24, 0], sizes = [2, 128], strides = [1, 1]} : vector<32x128xbf16> to vector<2x128xbf16>
    %31 = vector.extract_strided_slice %12 {offsets = [26, 0], sizes = [2, 128], strides = [1, 1]} : vector<32x128xbf16> to vector<2x128xbf16>
    %32 = tpu.concatenate %13, %26, %27, %13, %28, %29, %13, %30, %31 in 1 : vector<2x128xbf16>, vector<2x128xbf16>, vector<2x128xbf16>, vector<2x128xbf16>, vector<2x128xbf16>, vector<2x128xbf16>, vector<2x128xbf16>, vector<2x128xbf16>, vector<2x128xbf16> -> vector<2x1152xbf16>
    %33 = vector.extract_strided_slice %12 {offsets = [10, 0], sizes = [2, 128], strides = [1, 1]} : vector<32x128xbf16> to vector<2x128xbf16>
    %34 = vector.extract_strided_slice %12 {offsets = [12, 0], sizes = [2, 128], strides = [1, 1]} : vector<32x128xbf16> to vector<2x128xbf16>
    %35 = vector.extract_strided_slice %12 {offsets = [14, 0], sizes = [2, 128], strides = [1, 1]} : vector<32x128xbf16> to vector<2x128xbf16>
    %36 = vector.extract_strided_slice %12 {offsets = [18, 0], sizes = [2, 128], strides = [1, 1]} : vector<32x128xbf16> to vector<2x128xbf16>
    %37 = vector.extract_strided_slice %12 {offsets = [20, 0], sizes = [2, 128], strides = [1, 1]} : vector<32x128xbf16> to vector<2x128xbf16>
    %38 = vector.extract_strided_slice %12 {offsets = [22, 0], sizes = [2, 128], strides = [1, 1]} : vector<32x128xbf16> to vector<2x128xbf16>
    %39 = vector.extract_strided_slice %12 {offsets = [26, 0], sizes = [2, 128], strides = [1, 1]} : vector<32x128xbf16> to vector<2x128xbf16>
    %40 = vector.extract_strided_slice %12 {offsets = [28, 0], sizes = [2, 128], strides = [1, 1]} : vector<32x128xbf16> to vector<2x128xbf16>
    %41 = vector.extract_strided_slice %12 {offsets = [30, 0], sizes = [2, 128], strides = [1, 1]} : vector<32x128xbf16> to vector<2x128xbf16>
    %42 = tpu.concatenate %33, %34, %35, %36, %37, %38, %39, %40, %41 in 1 : vector<2x128xbf16>, vector<2x128xbf16>, vector<2x128xbf16>, vector<2x128xbf16>, vector<2x128xbf16>, vector<2x128xbf16>, vector<2x128xbf16>, vector<2x128xbf16>, vector<2x128xbf16> -> vector<2x1152xbf16>
    %43 = tpu.concatenate %18, %25, %32, %42 in 0 : vector<2x1152xbf16>, vector<2x1152xbf16>, vector<2x1152xbf16>, vector<2x1152xbf16> -> vector<8x1152xbf16>
    %c0_10 = arith.constant 0 : index
    %c0_11 = arith.constant 0 : index
    %44 = vector.load %arg5[%c0_10, %c0_11] : memref<1152x128xbf16, #tpu.memory_space<vmem>>, vector<1152x128xbf16>
    %cst_12 = arith.constant dense<0.000000e+00> : vector<8x128xf32>
    %45 = tpu.matmul %43, %44, %cst_12 {dimension_numbers = #tpu.dot_dimension_numbers<[1], [0], [0], [1], [0, 0, 1, 1], [], []>} : vector<8x1152xbf16>, vector<1152x128xbf16>, vector<8x128xf32> -> vector<8x128xf32>
    %cst_13 = arith.constant 0.000000e+00 : f32
    %46 = vector.broadcast %cst_13 : f32 to vector<8x128xf32>
    %47 = arith.maximumf %45, %46 : vector<8x128xf32>
    %c0_14 = arith.constant 0 : index
    %c0_15 = arith.constant 0 : index
    %48 = vector.load %arg6[%c0_14, %c0_15] : memref<1x128xf32, #tpu.memory_space<vmem>>, vector<1x128xf32>
    %49 = vector.broadcast %48 : vector<1x128xf32> to vector<8x128xf32>
    %50 = arith.mulf %47, %49 : vector<8x128xf32>
    %c0_16 = arith.constant 0 : index
    %c0_17 = arith.constant 0 : index
    %51 = vector.load %arg7[%c0_16, %c0_17] : memref<1x128xf32, #tpu.memory_space<vmem>>, vector<1x128xf32>
    %52 = vector.broadcast %51 : vector<1x128xf32> to vector<8x128xf32>
    %53 = arith.addf %50, %52 : vector<8x128xf32>
    %54 = arith.truncf %53 : vector<8x128xf32> to vector<8x128xbf16>
    %55 = vector.extract_strided_slice %54 {offsets = [0, 0], sizes = [2, 128], strides = [1, 1]} : vector<8x128xbf16> to vector<2x128xbf16>
    %56 = vector.extract_strided_slice %54 {offsets = [2, 0], sizes = [2, 128], strides = [1, 1]} : vector<8x128xbf16> to vector<2x128xbf16>
    %57 = vector.extract_strided_slice %54 {offsets = [4, 0], sizes = [2, 128], strides = [1, 1]} : vector<8x128xbf16> to vector<2x128xbf16>
    %58 = vector.extract_strided_slice %54 {offsets = [6, 0], sizes = [2, 128], strides = [1, 1]} : vector<8x128xbf16> to vector<2x128xbf16>
    %59 = tpu.concatenate %55, %56, %57, %58 in 1 : vector<2x128xbf16>, vector<2x128xbf16>, vector<2x128xbf16>, vector<2x128xbf16> -> vector<2x512xbf16>
    %c0_18 = arith.constant 0 : index
    %c0_19 = arith.constant 0 : index
    %60 = vector.load %arg8[%c0_18, %c0_19] : memref<512x128xbf16, #tpu.memory_space<vmem>>, vector<512x128xbf16>
    %cst_20 = arith.constant dense<0.000000e+00> : vector<2x128xf32>
    %61 = tpu.matmul %59, %60, %cst_20 {dimension_numbers = #tpu.dot_dimension_numbers<[1], [0], [0], [1], [0, 0, 1, 1], [], []>} : vector<2x512xbf16>, vector<512x128xbf16>, vector<2x128xf32> -> vector<2x128xf32>
    %cst_21 = arith.constant 0.000000e+00 : f32
    %62 = vector.broadcast %cst_21 : f32 to vector<2x128xf32>
    %63 = arith.maximumf %61, %62 : vector<2x128xf32>
    %c0_22 = arith.constant 0 : index
    %c0_23 = arith.constant 0 : index
    %64 = vector.load %arg9[%c0_22, %c0_23] : memref<1x128xf32, #tpu.memory_space<vmem>>, vector<1x128xf32>
    %65 = vector.broadcast %64 : vector<1x128xf32> to vector<2x128xf32>
    %66 = arith.mulf %63, %65 : vector<2x128xf32>
    %c0_24 = arith.constant 0 : index
    %c0_25 = arith.constant 0 : index
    %67 = vector.load %arg10[%c0_24, %c0_25] : memref<1x128xf32, #tpu.memory_space<vmem>>, vector<1x128xf32>
    %68 = vector.broadcast %67 : vector<1x128xf32> to vector<2x128xf32>
    %69 = arith.addf %66, %68 : vector<2x128xf32>
    %70 = arith.truncf %69 : vector<2x128xf32> to vector<2x128xbf16>
    %c0_26 = arith.constant 0 : index
    %c0_27 = arith.constant 0 : index
    %71 = vector.load %arg11[%c0_26, %c0_27] : memref<128x256xbf16, #tpu.memory_space<vmem>>, vector<128x256xbf16>
    %cst_28 = arith.constant dense<0.000000e+00> : vector<2x256xf32>
    %72 = tpu.matmul %70, %71, %cst_28 {dimension_numbers = #tpu.dot_dimension_numbers<[1], [0], [0], [1], [0, 0, 1, 1], [], []>} : vector<2x128xbf16>, vector<128x256xbf16>, vector<2x256xf32> -> vector<2x256xf32>
    %c0_29 = arith.constant 0 : index
    %c0_30 = arith.constant 0 : index
    %73 = vector.load %arg12[%c0_29, %c0_30] : memref<1x256xf32, #tpu.memory_space<vmem>>, vector<1x256xf32>
    %74 = vector.broadcast %73 : vector<1x256xf32> to vector<2x256xf32>
    %75 = arith.addf %72, %74 : vector<2x256xf32>
    %cst_31 = arith.constant 0.000000e+00 : f32
    %76 = vector.broadcast %cst_31 : f32 to vector<2x256xf32>
    %77 = arith.maximumf %75, %76 : vector<2x256xf32>
    %78 = arith.truncf %77 : vector<2x256xf32> to vector<2x256xbf16>
    %c0_32 = arith.constant 0 : index
    %c0_33 = arith.constant 0 : index
    %79 = vector.load %arg13[%c0_32, %c0_33] : memref<256x128xbf16, #tpu.memory_space<vmem>>, vector<256x128xbf16>
    %cst_34 = arith.constant dense<0.000000e+00> : vector<2x128xf32>
    %80 = tpu.matmul %78, %79, %cst_34 {dimension_numbers = #tpu.dot_dimension_numbers<[1], [0], [0], [1], [0, 0, 1, 1], [], []>} : vector<2x256xbf16>, vector<256x128xbf16>, vector<2x128xf32> -> vector<2x128xf32>
    %c0_35 = arith.constant 0 : index
    %c0_36 = arith.constant 0 : index
    %81 = vector.load %arg14[%c0_35, %c0_36] : memref<1x128xf32, #tpu.memory_space<vmem>>, vector<1x128xf32>
    %82 = vector.broadcast %81 : vector<1x128xf32> to vector<2x128xf32>
    %83 = arith.addf %80, %82 : vector<2x128xf32>
    %c0_37 = arith.constant 0 : index
    %c0_38 = arith.constant 0 : index
    %c0_39 = arith.constant 0 : index
    %84 = vector.load %arg15[%c0_37, %c0_38, %c0_39] : memref<1x2x128xf32, #tpu.memory_space<vmem>>, vector<1x2x128xf32>
    %85 = vector.shape_cast %84 : vector<1x2x128xf32> to vector<2x128xf32>
    %86 = vector.shape_cast %83 : vector<2x128xf32> to vector<1x2x128xf32>
    tpu.vector_store %arg15[%c0_37, %c0_38, %c0_39], %86 {strides = array<i32>} : memref<1x2x128xf32, #tpu.memory_space<vmem>>, vector<1x2x128xf32>,
    return
  }
  func.func @transform_0(%arg0: i32) -> (i32, i32, i32) {
    %c0_i32 = arith.constant 0 : i32
    %c0_i32_0 = arith.constant 0 : i32
    %c0_i32_1 = arith.constant 0 : i32
    return %arg0, %c0_i32, %c0_i32_0 : i32, i32, i32
  }
  func.func @transform_1(%arg0: i32) -> (i32, i32) {
    %c0_i32 = arith.constant 0 : i32
    %c0_i32_0 = arith.constant 0 : i32
    %c0_i32_1 = arith.constant 0 : i32
    return %c0_i32, %c0_i32_0 : i32, i32
  }
  func.func @transform_2(%arg0: i32) -> (i32, i32) {
    %c0_i32 = arith.constant 0 : i32
    %c0_i32_0 = arith.constant 0 : i32
    %c0_i32_1 = arith.constant 0 : i32
    return %c0_i32, %c0_i32_0 : i32, i32
  }
  func.func @transform_3(%arg0: i32) -> (i32, i32) {
    %c0_i32 = arith.constant 0 : i32
    %c0_i32_0 = arith.constant 0 : i32
    %c0_i32_1 = arith.constant 0 : i32
    return %c0_i32, %c0_i32_0 : i32, i32
  }
  func.func @transform_4(%arg0: i32) -> (i32, i32) {
    %c0_i32 = arith.constant 0 : i32
    %c0_i32_0 = arith.constant 0 : i32
    %c0_i32_1 = arith.constant 0 : i32
    return %c0_i32, %c0_i32_0 : i32, i32
  }
  func.func @transform_5(%arg0: i32) -> (i32, i32) {
    %c0_i32 = arith.constant 0 : i32
    %c0_i32_0 = arith.constant 0 : i32
    %c0_i32_1 = arith.constant 0 : i32
    return %c0_i32, %c0_i32_0 : i32, i32
  }
  func.func @transform_6(%arg0: i32) -> (i32, i32) {
    %c0_i32 = arith.constant 0 : i32
    %c0_i32_0 = arith.constant 0 : i32
    %c0_i32_1 = arith.constant 0 : i32
    return %c0_i32, %c0_i32_0 : i32, i32
  }
  func.func @transform_7(%arg0: i32) -> (i32, i32) {
    %c0_i32 = arith.constant 0 : i32
    %c0_i32_0 = arith.constant 0 : i32
    %c0_i32_1 = arith.constant 0 : i32
    return %c0_i32, %c0_i32_0 : i32, i32
  }
  func.func @transform_8(%arg0: i32) -> (i32, i32) {
    %c0_i32 = arith.constant 0 : i32
    %c0_i32_0 = arith.constant 0 : i32
    %c0_i32_1 = arith.constant 0 : i32
    return %c0_i32, %c0_i32_0 : i32, i32
  }
  func.func @transform_9(%arg0: i32) -> (i32, i32) {
    %c0_i32 = arith.constant 0 : i32
    %c0_i32_0 = arith.constant 0 : i32
    %c0_i32_1 = arith.constant 0 : i32
    return %c0_i32, %c0_i32_0 : i32, i32
  }
  func.func @transform_10(%arg0: i32) -> (i32, i32) {
    %c0_i32 = arith.constant 0 : i32
    %c0_i32_0 = arith.constant 0 : i32
    %c0_i32_1 = arith.constant 0 : i32
    return %c0_i32, %c0_i32_0 : i32, i32
  }
  func.func @transform_11(%arg0: i32) -> (i32, i32) {
    %c0_i32 = arith.constant 0 : i32
    %c0_i32_0 = arith.constant 0 : i32
    %c0_i32_1 = arith.constant 0 : i32
    return %c0_i32, %c0_i32_0 : i32, i32
  }
  func.func @transform_12(%arg0: i32) -> (i32, i32) {
    %c0_i32 = arith.constant 0 : i32
    %c0_i32_0 = arith.constant 0 : i32
    %c0_i32_1 = arith.constant 0 : i32
    return %c0_i32, %c0_i32_0 : i32, i32
  }
  func.func @transform_13(%arg0: i32) -> (i32, i32) {
    %c0_i32 = arith.constant 0 : i32
    %c0_i32_0 = arith.constant 0 : i32
    %c0_i32_1 = arith.constant 0 : i32
    return %c0_i32, %c0_i32_0 : i32, i32
  }
  func.func @transform_14(%arg0: i32) -> (i32, i32, i32) {
    %c0_i32 = arith.constant 0 : i32
    %c0_i32_0 = arith.constant 0 : i32
    %c0_i32_1 = arith.constant 0 : i32
    return %arg0, %c0_i32, %c0_i32_0 : i32, i32, i32
  }
}

</mosaic_0001>

<bundles_post_ra>
// kernel: magical_cnn_forward.3
= control target key start
LH: loop header
LB: loop body
LE: loop exit
PB: predicated region body
PF: predicated region fallthrough
CT: control target
= control target key end

     0   :  { %s1230_s15 = smov 0   ;;  %s1388_s0 = inlined_call_operand.vmem [shape: bf16[512,128], index: 0, kind: input, shape index: {}]   ;;  %s1389_s1 = inlined_call_operand.vmem [shape: bf16[128,128], index: 1, kind: input, shape index: {}]   ;;  %s1390_s2 = inlined_call_operand.vmem [shape: f32[1,128], index: 2, kind: input, shape index: {}]   ;;  %s1391_s3 = inlined_call_operand.vmem [shape: f32[1,128], index: 3, kind: input, shape index: {}]   ;;  %s1392_s4 = inlined_call_operand.vmem [shape: bf16[512,128], index: 4, kind: output, shape index: {}]  }
   0x1 LB: > { %s881_s16 = sadd.s32 4294967295, %s1203_s15   ;;  %p885_p0 = scmp.ge.s32.totalorder %s1203_s15, 1  ;;  %s1203_s15 = sphi %s1230_s15, %s14_s15  }
   0x2   : > { %p163_p1 = scmp.lt.s32.totalorder %s1203_s15, 3 }
   0x4   : > { %p164_p2 = pnand %p885_p0, %p163_p1 }
   0x5   : > { %v1173_v0 = vld [vmem:[%s1389_s1] sm:$0xff] (!%p164_p2)   ;;  %s886_s19 = sshll.u32 (!%p164_p2), %s881_s16, 5  ;;  %v1174_v1 = vld [vmem:[%s1389_s1 + $0x8] sm:$0xff] (!%p164_p2)   ;;  %v1175_v2 = vld [vmem:[%s1389_s1 + $0x10] sm:$0xff] (!%p164_p2)  }
   0x6   : > { %167 = sbr.rel (%p164_p2) target bundleno = 286 (0x11e), region = 36  ;;  %p190_p3 = scmp.lt.s32.totalorder (!%p164_p2), %s886_s19, 63  ;;  %1101 = vmatprep.subr.bf16.mxu0 (!%p164_p2), %v1173_v0  ;;  %1149 = vmatprep.subr.bf16.mxu1 (!%p164_p2), %v1173_v0  ;;  %v1176_v3 = vld [vmem:[%s1389_s1 + $0x18] sm:$0xff] (!%p164_p2)   ;;  %v1177_v6 = vld [vmem:[%s1389_s1 + $0x20] sm:$0xff] (!%p164_p2)   ;;  %v1178_v7 = vld [vmem:[%s1389_s1 + $0x28] sm:$0xff] (!%p164_p2)  }
   0x7   : > { %1102 = vmatpush3.bf16.msra.mxu0 (!%p164_p2), %v1173_v0  ;;  %1157 = vmatpush3.bf16.msra.mxu1 (!%p164_p2), %v1173_v0  ;;  %v1179_v8 = vld [vmem:[%s1389_s1 + $0x30] sm:$0xff] (!%p164_p2)   ;;  %v1180_v9 = vld [vmem:[%s1389_s1 + $0x38] sm:$0xff] (!%p164_p2)   ;;  %v1291_v25 = vld [vmem:[%s1390_s2] ss:$0 sm:$0xff] (!%p164_p2) }
   0x8   : > { %1103 = vmatprep.subr.bf16.mxu0 (!%p164_p2), %v1174_v1  ;;  %1150 = vmatprep.subr.bf16.mxu1 (!%p164_p2), %v1174_v1  ;;  %v1298_v41 = vld [vmem:[%s1391_s3] ss:$0 sm:$0xff] (!%p164_p2) }
   0xb   : > { %1104 = vmatpush3.bf16.msra.mxu0 (!%p164_p2), %v1174_v1  ;;  %1158 = vmatpush3.bf16.msra.mxu1 (!%p164_p2), %v1174_v1 }
   0xc   : > { %1105 = vmatprep.subr.bf16.mxu0 (!%p164_p2), %v1175_v2  ;;  %1151 = vmatprep.subr.bf16.mxu1 (!%p164_p2), %v1175_v2 }
   0xd   : > { %s1394_s19 = smov (!%p190_p3, %s886_s19), 63 }
   0xe   : > { %s887_s24 = sshll.u32 %s1394_s19, 2 }
   0xf   : > { %s1255_s27 = scalar_lea.vmem %s1388_s0, %s887_s24  ;;  %1106 = vmatpush3.bf16.msra.mxu0 %v1175_v2  ;;  %1159 = vmatpush3.bf16.msra.mxu1 %v1175_v2  ;;  %s1317_s20 = scalar_lea.vmem %s1392_s4, %s887_s24 }
  0x10   : > { %v1181_v4 = vld [vmem:[%s1255_s27] sm:$0xff]   ;;  %1107 = vmatprep.subr.bf16.mxu0 %v1176_v3  ;;  %1152 = vmatprep.subr.bf16.mxu1 %v1176_v3  ;;  %v1183_v10 = vld [vmem:[%s1255_s27 + $0x8] sm:$0xff]   ;;  %v1185_v12 = vld [vmem:[%s1255_s27 + $0x10] sm:$0xff]  }
  0x11   : > { %v1182_v5 = vld [vmem:[%s1255_s27 + $0x40] sm:$0xff]   ;;  %1117 = vmatprep.mubr.bf16.mxu0 %v1181_v4  ;;  %v1184_v11 = vld [vmem:[%s1255_s27 + $0x48] sm:$0xff]   ;;  %v1186_v13 = vld [vmem:[%s1255_s27 + $0x50] sm:$0xff]  }
  0x12   : > { %1133 = vmatprep.mubr.bf16.mxu1 %v1182_v5  ;;  %v1187_v14 = vld [vmem:[%s1255_s27 + $0x18] sm:$0xff]   ;;  %v1189_v16 = vld [vmem:[%s1255_s27 + $0x20] sm:$0xff]   ;;  %v1191_v18 = vld [vmem:[%s1255_s27 + $0x28] sm:$0xff]  }
  0x13   : > { %1108 = vmatpush3.bf16.msra.mxu0 %v1176_v3  ;;  %1160 = vmatpush3.bf16.msra.mxu1 %v1176_v3  ;;  %v1188_v15 = vld [vmem:[%s1255_s27 + $0x58] sm:$0xff]   ;;  %v1190_v17 = vld [vmem:[%s1255_s27 + $0x60] sm:$0xff]   ;;  %v1192_v19 = vld [vmem:[%s1255_s27 + $0x68] sm:$0xff]  }
  0x14   : > { %1109 = vmatprep.subr.bf16.mxu0 %v1177_v6  ;;  %1153 = vmatprep.subr.bf16.mxu1 %v1177_v6  ;;  %v1193_v20 = vld [vmem:[%s1255_s27 + $0x30] sm:$0xff]   ;;  %v1195_v22 = vld [vmem:[%s1255_s27 + $0x38] sm:$0xff]  }
  0x15   : > { %v1194_v21 = vld [vmem:[%s1255_s27 + $0x70] sm:$0xff]   ;;  %v1196_v23 = vld [vmem:[%s1255_s27 + $0x78] sm:$0xff]  }
  0x17   : > { %1110 = vmatpush3.bf16.msra.mxu0 %v1177_v6  ;;  %1161 = vmatpush3.bf16.msra.mxu1 %v1177_v6 }
  0x18   : > { %1111 = vmatprep.subr.bf16.mxu0 %v1178_v7  ;;  %1154 = vmatprep.subr.bf16.mxu1 %v1178_v7 }
  0x1b   : > { %1112 = vmatpush3.bf16.msra.mxu0 %v1178_v7  ;;  %1162 = vmatpush3.bf16.msra.mxu1 %v1178_v7 }
  0x1c   : > { %1113 = vmatprep.subr.bf16.mxu0 %v1179_v8  ;;  %1155 = vmatprep.subr.bf16.mxu1 %v1179_v8 }
  0x1f   : > { %1114 = vmatpush3.bf16.msra.mxu0 %v1179_v8  ;;  %1163 = vmatpush3.bf16.msra.mxu1 %v1179_v8 }
  0x20   : > { %1115 = vmatprep.subr.bf16.mxu0 %v1180_v9  ;;  %1156 = vmatprep.subr.bf16.mxu1 %v1180_v9 }
  0x23   : > { %1116 = vmatpush3.bf16.msra.mxu0 %v1180_v9  ;;  %1164 = vmatpush3.bf16.msra.mxu1 %v1180_v9 }
  0x26   : > { %1118 = vmatmul.mubr.bf16.vlgmr.msra.gmra.mrb[0].mxu0 %v1183_v10  ;;  %1134 = vmatmul.mubr.bf16.vlgmr.msra.gmra.mrb[0].mxu1 %v1184_v11 }
  0x27   : > { %1121 = vmatprep.mubr.bf16.mxu0 %v1185_v12  ;;  %1137 = vmatprep.mubr.bf16.mxu1 %v1186_v13 }
  0x2e   : > { %1122 = vmatmul.mubr.bf16.gmra.mrb[4].mxu0 %v1187_v14  ;;  %1138 = vmatmul.mubr.bf16.gmra.mrb[4].mxu1 %v1188_v15 }
  0x2f   : > { %1125 = vmatprep.mubr.bf16.mxu0 %v1189_v16  ;;  %1141 = vmatprep.mubr.bf16.mxu1 %v1190_v17 }
  0x36   : > { %1126 = vmatmul.mubr.bf16.gmra.mrb[8].mxu0 %v1191_v18  ;;  %1142 = vmatmul.mubr.bf16.gmra.mrb[8].mxu1 %v1192_v19 }
  0x37   : > { %1129 = vmatprep.mubr.bf16.mxu0 %v1193_v20  ;;  %1145 = vmatprep.mubr.bf16.mxu1 %v1194_v21 }
  0x3e   : > { %1130 = vmatmul.mubr.bf16.gmra.mrb[12].mxu0 %v1195_v22  ;;  %1146 = vmatmul.mubr.bf16.gmra.mrb[12].mxu1 %v1196_v23 }
  0xf9   : > { %v1119_v24 = vpop.f32.mrb[0].mxu0  ;;  %v1135_v26 = vpop.f32.mrb[0].mxu1 }
  0xfa   : > { %v557_v27 = vmax.f32 %v1119_v24, 0.0  ;;  %v573_v28 = vmax.f32 %v1135_v26, 0.0  ;;  %v428_v29 = vpop.f32.mrb[1].mxu0  ;;  %v492_v30 = vpop.f32.mrb[1].mxu1 }
  0xfb   : > { %v555_v31 = vmax.f32 %v428_v29, 0.0  ;;  %v571_v32 = vmax.f32 %v492_v30, 0.0  ;;  %v1120_v33 = vpop.f32.mrb[2].mxu0  ;;  %v1136_v34 = vpop.f32.mrb[2].mxu1 }
  0xfc   : > { %v596_v35 = vmul.f32 %v1291_v25, %v557_v27  ;;  %v612_v36 = vmul.f32 %v1291_v25, %v573_v28  ;;  %v558_v37 = vmax.f32 %v1120_v33, 0.0  ;;  %v574_v38 = vmax.f32 %v1136_v34, 0.0  ;;  %v431_v39 = vpop.f32.mrb[3].mxu0  ;;  %v495_v40 = vpop.f32.mrb[3].mxu1 }
  0xfd   : > { %v594_v42 = vmul.f32 %v1291_v25, %v555_v31  ;;  %v610_v43 = vmul.f32 %v1291_v25, %v571_v32  ;;  %v556_v44 = vmax.f32 %v431_v39, 0.0  ;;  %v572_v45 = vmax.f32 %v495_v40, 0.0 }
  0xfe   : > { %v597_v46 = vmul.f32 %v1291_v25, %v558_v37  ;;  %v613_v47 = vmul.f32 %v1291_v25, %v574_v38  ;;  %v635_v50 = vadd.f32 %v1298_v41, %v596_v35  ;;  %v651_v51 = vadd.f32 %v1298_v41, %v612_v36 }
  0xff   : > { %v595_v48 = vmul.f32 %v1291_v25, %v556_v44  ;;  %v611_v49 = vmul.f32 %v1291_v25, %v572_v45  ;;  %v633_v54 = vadd.f32 %v1298_v41, %v594_v42  ;;  %v649_v55 = vadd.f32 %v1298_v41, %v610_v43 }
 0x100   : > { %v636_v52 = vadd.f32 %v1298_v41, %v597_v46  ;;  %v652_v53 = vadd.f32 %v1298_v41, %v613_v47 }
 0x101   : > { %v634_v56 = vadd.f32 %v1298_v41, %v595_v48  ;;  %v650_v57 = vadd.f32 %v1298_v41, %v611_v49  ;;  %v1123_v58 = vpop.f32.mrb[4].mxu0  ;;  %v1139_v59 = vpop.f32.mrb[4].mxu1 }
 0x102   : > { %v990_v60 = vpack.c.bf16 %v636_v52, %v635_v50  ;;  %v1030_v61 = vpack.c.bf16 %v652_v53, %v651_v51  ;;  %v561_v62 = vmax.f32 %v1123_v58, 0.0  ;;  %v577_v63 = vmax.f32 %v1139_v59, 0.0  ;;  %v444_v0 = vpop.f32.mrb[5].mxu0  ;;  %v508_v1 = vpop.f32.mrb[5].mxu1 }
 0x103   : > { %v985_v2 = vpack.c.bf16 %v634_v56, %v633_v54  ;;  %v1025_v3 = vpack.c.bf16 %v650_v57, %v649_v55  ;;  %v559_v4 = vmax.f32 %v444_v0, 0.0  ;;  %v575_v5 = vmax.f32 %v508_v1, 0.0  ;;  %v1124_v6 = vpop.f32.mrb[6].mxu0  ;;  %v1140_v7 = vpop.f32.mrb[6].mxu1 }
 0x104   : > { %1062 = vst [vmem:[%s1317_s20 + $0x8] sm:$0xff] %v990_v60   ;;  %1070 = vst [vmem:[%s1317_s20 + $0x48] sm:$0xff] %v1030_v61   ;;  %v600_v8 = vmul.f32 %v1291_v25, %v561_v62  ;;  %v616_v9 = vmul.f32 %v1291_v25, %v577_v63  ;;  %v562_v10 = vmax.f32 %v1124_v6, 0.0  ;;  %v578_v11 = vmax.f32 %v1140_v7, 0.0  ;;  %v447_v12 = vpop.f32.mrb[7].mxu0  ;;  %v511_v13 = vpop.f32.mrb[7].mxu1 }
 0x105   : > { %986 = vst [vmem:[%s1317_s20] sm:$0xff] %v985_v2   ;;  %1069 = vst [vmem:[%s1317_s20 + $0x40] sm:$0xff] %v1025_v3   ;;  %v598_v14 = vmul.f32 %v1291_v25, %v559_v4  ;;  %v614_v15 = vmul.f32 %v1291_v25, %v575_v5  ;;  %v560_v16 = vmax.f32 %v447_v12, 0.0  ;;  %v576_v17 = vmax.f32 %v511_v13, 0.0 }
 0x106   : > { %v601_v18 = vmul.f32 %v1291_v25, %v562_v10  ;;  %v617_v19 = vmul.f32 %v1291_v25, %v578_v11  ;;  %v639_v22 = vadd.f32 %v1298_v41, %v600_v8  ;;  %v655_v23 = vadd.f32 %v1298_v41, %v616_v9 }
 0x107   : > { %v599_v20 = vmul.f32 %v1291_v25, %v560_v16  ;;  %v615_v21 = vmul.f32 %v1291_v25, %v576_v17  ;;  %v637_v27 = vadd.f32 %v1298_v41, %v598_v14  ;;  %v653_v28 = vadd.f32 %v1298_v41, %v614_v15 }
 0x108   : > { %v640_v24 = vadd.f32 %v1298_v41, %v601_v18  ;;  %v656_v26 = vadd.f32 %v1298_v41, %v617_v19 }
 0x109   : > { %v638_v29 = vadd.f32 %v1298_v41, %v599_v20  ;;  %v654_v30 = vadd.f32 %v1298_v41, %v615_v21  ;;  %v1127_v31 = vpop.f32.mrb[8].mxu0  ;;  %v1143_v32 = vpop.f32.mrb[8].mxu1 }
 0x10a   : > { %v1000_v33 = vpack.c.bf16 %v640_v24, %v639_v22  ;;  %v1040_v34 = vpack.c.bf16 %v656_v26, %v655_v23  ;;  %v565_v35 = vmax.f32 %v1127_v31, 0.0  ;;  %v581_v36 = vmax.f32 %v1143_v32, 0.0  ;;  %v460_v37 = vpop.f32.mrb[9].mxu0  ;;  %v524_v38 = vpop.f32.mrb[9].mxu1 }
 0x10b   : > { %v995_v39 = vpack.c.bf16 %v638_v29, %v637_v27  ;;  %v1035_v40 = vpack.c.bf16 %v654_v30, %v653_v28  ;;  %v563_v42 = vmax.f32 %v460_v37, 0.0  ;;  %v579_v43 = vmax.f32 %v524_v38, 0.0  ;;  %v1128_v44 = vpop.f32.mrb[10].mxu0  ;;  %v1144_v45 = vpop.f32.mrb[10].mxu1 }
 0x10c   : > { %1064 = vst [vmem:[%s1317_s20 + $0x18] sm:$0xff] %v1000_v33   ;;  %1072 = vst [vmem:[%s1317_s20 + $0x58] sm:$0xff] %v1040_v34   ;;  %v604_v46 = vmul.f32 %v1291_v25, %v565_v35  ;;  %v620_v47 = vmul.f32 %v1291_v25, %v581_v36  ;;  %v566_v48 = vmax.f32 %v1128_v44, 0.0  ;;  %v582_v49 = vmax.f32 %v1144_v45, 0.0  ;;  %v463_v50 = vpop.f32.mrb[11].mxu0  ;;  %v527_v51 = vpop.f32.mrb[11].mxu1 }
 0x10d   : > { %1063 = vst [vmem:[%s1317_s20 + $0x10] sm:$0xff] %v995_v39   ;;  %1071 = vst [vmem:[%s1317_s20 + $0x50] sm:$0xff] %v1035_v40   ;;  %v602_v52 = vmul.f32 %v1291_v25, %v563_v42  ;;  %v618_v53 = vmul.f32 %v1291_v25, %v579_v43  ;;  %v564_v54 = vmax.f32 %v463_v50, 0.0  ;;  %v580_v55 = vmax.f32 %v527_v51, 0.0 }
 0x10e   : > { %v605_v56 = vmul.f32 %v1291_v25, %v566_v48  ;;  %v621_v57 = vmul.f32 %v1291_v25, %v582_v49  ;;  %v643_v60 = vadd.f32 %v1298_v41, %v604_v46  ;;  %v659_v61 = vadd.f32 %v1298_v41, %v620_v47 }
 0x10f   : > { %v603_v58 = vmul.f32 %v1291_v25, %v564_v54  ;;  %v619_v59 = vmul.f32 %v1291_v25, %v580_v55  ;;  %v641_v0 = vadd.f32 %v1298_v41, %v602_v52  ;;  %v657_v1 = vadd.f32 %v1298_v41, %v618_v53 }
 0x110   : > { %v644_v62 = vadd.f32 %v1298_v41, %v605_v56  ;;  %v660_v63 = vadd.f32 %v1298_v41, %v621_v57 }
 0x111   : > { %v642_v2 = vadd.f32 %v1298_v41, %v603_v58  ;;  %v658_v3 = vadd.f32 %v1298_v41, %v619_v59  ;;  %v1131_v4 = vpop.f32.mrb[12].mxu0  ;;  %v1147_v5 = vpop.f32.mrb[12].mxu1 }
 0x112   : > { %v1010_v6 = vpack.c.bf16 %v644_v62, %v643_v60  ;;  %v1050_v7 = vpack.c.bf16 %v660_v63, %v659_v61  ;;  %v569_v8 = vmax.f32 %v1131_v4, 0.0  ;;  %v585_v9 = vmax.f32 %v1147_v5, 0.0  ;;  %v476_v10 = vpop.f32.mrb[13].mxu0  ;;  %v540_v11 = vpop.f32.mrb[13].mxu1 }
 0x113   : > { %v1005_v12 = vpack.c.bf16 %v642_v2, %v641_v0  ;;  %v1045_v13 = vpack.c.bf16 %v658_v3, %v657_v1  ;;  %v567_v14 = vmax.f32 %v476_v10, 0.0  ;;  %v583_v15 = vmax.f32 %v540_v11, 0.0  ;;  %v1132_v16 = vpop.f32.mrb[14].mxu0  ;;  %v1148_v17 = vpop.f32.mrb[14].mxu1 }
 0x114   : > { %1066 = vst [vmem:[%s1317_s20 + $0x28] sm:$0xff] %v1010_v6   ;;  %1074 = vst [vmem:[%s1317_s20 + $0x68] sm:$0xff] %v1050_v7   ;;  %v608_v18 = vmul.f32 %v1291_v25, %v569_v8  ;;  %v624_v19 = vmul.f32 %v1291_v25, %v585_v9  ;;  %v570_v20 = vmax.f32 %v1132_v16, 0.0  ;;  %v586_v21 = vmax.f32 %v1148_v17, 0.0  ;;  %v479_v22 = vpop.f32.mrb[15].mxu0  ;;  %v543_v23 = vpop.f32.mrb[15].mxu1 }
 0x115   : > { %1065 = vst [vmem:[%s1317_s20 + $0x20] sm:$0xff] %v1005_v12   ;;  %1073 = vst [vmem:[%s1317_s20 + $0x60] sm:$0xff] %v1045_v13   ;;  %v606_v24 = vmul.f32 %v1291_v25, %v567_v14  ;;  %v622_v26 = vmul.f32 %v1291_v25, %v583_v15  ;;  %v568_v27 = vmax.f32 %v479_v22, 0.0  ;;  %v584_v28 = vmax.f32 %v543_v23, 0.0 }
 0x116   : > { %v609_v29 = vmul.f32 %v1291_v25, %v570_v20  ;;  %v625_v30 = vmul.f32 %v1291_v25, %v586_v21  ;;  %v647_v33 = vadd.f32 %v1298_v41, %v608_v18  ;;  %v663_v34 = vadd.f32 %v1298_v41, %v624_v19 }
 0x117   : > { %v607_v31 = vmul.f32 %v1291_v25, %v568_v27  ;;  %v623_v32 = vmul.f32 %v1291_v25, %v584_v28  ;;  %v645_v37 = vadd.f32 %v1298_v41, %v606_v24  ;;  %v661_v38 = vadd.f32 %v1298_v41, %v622_v26 }
 0x118   : > { %v648_v35 = vadd.f32 %v1298_v41, %v609_v29  ;;  %v664_v36 = vadd.f32 %v1298_v41, %v625_v30 }
 0x119   : > { %v646_v39 = vadd.f32 %v1298_v41, %v607_v31  ;;  %v662_v40 = vadd.f32 %v1298_v41, %v623_v32 }
 0x11a   : > { %v1020_v42 = vpack.c.bf16 %v648_v35, %v647_v33  ;;  %v1060_v43 = vpack.c.bf16 %v664_v36, %v663_v34 }
 0x11b   : > { %v1015_v25 = vpack.c.bf16 %v646_v39, %v645_v37  ;;  %v1055_v44 = vpack.c.bf16 %v662_v40, %v661_v38 }
 0x11c   : > { %1068 = vst [vmem:[%s1317_s20 + $0x38] sm:$0xff] %v1020_v42   ;;  %1076 = vst [vmem:[%s1317_s20 + $0x78] sm:$0xff] %v1060_v43  }
 0x11d   : > { %1067 = vst [vmem:[%s1317_s20 + $0x30] sm:$0xff] %v1015_v25   ;;  %1075 = vst [vmem:[%s1317_s20 + $0x70] sm:$0xff] %v1055_v44  }
 0x11e PF: > { %s14_s15 = sadd.s32 1, %s1203_s15  }
 0x11f   : > { %p11_p4 = scmp.ge.s32.totalorder %s14_s15, 4  }
 0x121   :  { %13 = sbr.rel (!%p11_p4) target bundleno = 1 (0x1), region = 66 }

// kernel: magical_cnn_forward.4
= control target key start
LH: loop header
LB: loop body
LE: loop exit
PB: predicated region body
PF: predicated region fallthrough
CT: control target
= control target key end

     0   :  { %s2002_s15 = smov 0   ;;  %s2288_s0 = inlined_call_operand.vmem [shape: bf16[128,1152], index: 0, kind: input, shape index: {}]   ;;  %s2289_s1 = inlined_call_operand.vmem [shape: bf16[1152,128], index: 1, kind: input, shape index: {}]   ;;  %s2290_s2 = inlined_call_operand.vmem [shape: f32[1,128], index: 2, kind: input, shape index: {}]   ;;  %s2291_s3 = inlined_call_operand.vmem [shape: f32[1,128], index: 3, kind: input, shape index: {}]   ;;  %s2292_s4 = inlined_call_operand.vmem [shape: bf16[128,128], index: 4, kind: output, shape index: {}]  }
   0x1 LB: > { %s1464_s16 = sadd.s32 4294967295, %s1975_s15   ;;  %p1468_p0 = scmp.ge.s32.totalorder %s1975_s15, 1  ;;  %s1975_s15 = sphi %s2002_s15, %s14_s15  }
   0x2   : > { %p164_p1 = scmp.lt.s32.totalorder %s1975_s15, 3 }
   0x4   : > { %p165_p2 = pnand %p1468_p0, %p164_p1 }
   0x5   : > { %v1845_v0 = vld [vmem:[%s2289_s1 + $0x40] sm:$0xff] (!%p165_p2)   ;;  %v1849_v4 = vld [vmem:[%s2289_s1 + $0x48] sm:$0xff] (!%p165_p2)   ;;  %v1853_v8 = vld [vmem:[%s2289_s1 + $0x50] sm:$0xff] (!%p165_p2)   ;;  %s1469_s23 = sshll.u32 (!%p165_p2), %s1464_s16, 3 }
   0x6   : > { %168 = sbr.rel (%p165_p2) target bundleno = 331 (0x14b), region = 36  ;;  %v1846_v1 = vld [vmem:[%s2289_s1 + $0xc0] sm:$0xff] (!%p165_p2)   ;;  %1624 = vmatprep.subr.bf16.mxu0 (!%p165_p2), %v1845_v0  ;;  %v1850_v5 = vld [vmem:[%s2289_s1 + $0xc8] sm:$0xff] (!%p165_p2)   ;;  %v1854_v9 = vld [vmem:[%s2289_s1 + $0xd0] sm:$0xff] (!%p165_p2)   ;;  %p192_p3 = scmp.lt.s32.totalorder (!%p165_p2), %s1469_s23, 15 }
   0x7   : > { %v1847_v2 = vld [vmem:[%s2289_s1] sm:$0xff] (!%p165_p2)   ;;  %1664 = vmatprep.subr.bf16.mxu1 (!%p165_p2), %v1846_v1  ;;  %v1851_v6 = vld [vmem:[%s2289_s1 + $0x8] sm:$0xff] (!%p165_p2)   ;;  %v1855_v10 = vld [vmem:[%s2289_s1 + $0x10] sm:$0xff] (!%p165_p2)  }
   0x8   : > { %v1848_v3 = vld [vmem:[%s2289_s1 + $0x80] sm:$0xff] (!%p165_p2)   ;;  %1625 = vmatpush3.bf16.msra.mxu0 (!%p165_p2), %v1847_v2  ;;  %v1852_v7 = vld [vmem:[%s2289_s1 + $0x88] sm:$0xff] (!%p165_p2)   ;;  %v1856_v11 = vld [vmem:[%s2289_s1 + $0x90] sm:$0xff] (!%p165_p2)  }
   0x9   : > { %1665 = vmatpush3.bf16.msra.mxu1 (!%p165_p2), %v1848_v3  ;;  %1626 = vmatprep.subr.bf16.mxu0 (!%p165_p2), %v1849_v4  ;;  %v1857_v12 = vld [vmem:[%s2289_s1 + $0x58] sm:$0xff] (!%p165_p2)   ;;  %v1861_v16 = vld [vmem:[%s2289_s1 + $0x60] sm:$0xff] (!%p165_p2)   ;;  %v1865_v20 = vld [vmem:[%s2289_s1 + $0x68] sm:$0xff] (!%p165_p2)  }
   0xa   : > { %1666 = vmatprep.subr.bf16.mxu1 (!%p165_p2), %v1850_v5  ;;  %v1858_v13 = vld [vmem:[%s2289_s1 + $0xd8] sm:$0xff] (!%p165_p2)   ;;  %v1862_v17 = vld [vmem:[%s2289_s1 + $0xe0] sm:$0xff] (!%p165_p2)   ;;  %v1866_v21 = vld [vmem:[%s2289_s1 + $0xe8] sm:$0xff] (!%p165_p2)  }
   0xb   : > { %v1859_v14 = vld [vmem:[%s2289_s1 + $0x18] sm:$0xff] (!%p165_p2)   ;;  %v1863_v18 = vld [vmem:[%s2289_s1 + $0x20] sm:$0xff] (!%p165_p2)   ;;  %v1867_v22 = vld [vmem:[%s2289_s1 + $0x28] sm:$0xff] (!%p165_p2)  }
   0xc   : > { %1627 = vmatpush3.bf16.msra.mxu0 (!%p165_p2), %v1851_v6  ;;  %v1860_v15 = vld [vmem:[%s2289_s1 + $0x98] sm:$0xff] (!%p165_p2)   ;;  %v1864_v19 = vld [vmem:[%s2289_s1 + $0xa0] sm:$0xff] (!%p165_p2)   ;;  %v1868_v23 = vld [vmem:[%s2289_s1 + $0xa8] sm:$0xff] (!%p165_p2)  }
   0xd   : > { %1667 = vmatpush3.bf16.msra.mxu1 %v1852_v7  ;;  %1628 = vmatprep.subr.bf16.mxu0 %v1853_v8  ;;  %s2294_s23 = smov (!%p192_p3, %s1469_s23), 15  ;;  %v1869_v24 = vld [vmem:[%s2289_s1 + $0x70] sm:$0xff]   ;;  %v1873_v28 = vld [vmem:[%s2289_s1 + $0x78] sm:$0xff]   ;;  %v1883_v36 = vld [vmem:[%s2289_s1 + $0x140] sm:$0xff]  }
   0xe   : > { %1668 = vmatprep.subr.bf16.mxu1 %v1854_v9  ;;  %v1870_v25 = vld [vmem:[%s2289_s1 + $0xf0] sm:$0xff]   ;;  %s1836_s21 = smul.u32 36, %s2294_s23  ;;  %v1874_v29 = vld [vmem:[%s2289_s1 + $0xf8] sm:$0xff]   ;;  %v1884_v37 = vld [vmem:[%s2289_s1 + $0x1c0] sm:$0xff]   ;;  %s1472_s28 = sshll.u32 %s2294_s23, 2 }
   0xf   : > { %v1871_v26 = vld [vmem:[%s2289_s1 + $0x30] sm:$0xff]   ;;  %v1875_v30 = vld [vmem:[%s2289_s1 + $0x38] sm:$0xff]   ;;  %v1885_v38 = vld [vmem:[%s2289_s1 + $0x100] sm:$0xff]   ;;  %s202_s5 = scalar_lea.vmem %s2292_s4, %s1472_s28 }
  0x10   : > { %1629 = vmatpush3.bf16.msra.mxu0 %v1855_v10  ;;  %v1872_v27 = vld [vmem:[%s2289_s1 + $0xb0] sm:$0xff]   ;;  %s2108_s6 = scalar_lea.vmem %s2288_s0, %s1836_s21  ;;  %v1876_v31 = vld [vmem:[%s2289_s1 + $0xb8] sm:$0xff]   ;;  %v1886_v39 = vld [vmem:[%s2289_s1 + $0x180] sm:$0xff]  }
  0x11   : > { %1669 = vmatpush3.bf16.msra.mxu1 %v1856_v11  ;;  %1630 = vmatprep.subr.bf16.mxu0 %v1857_v12  ;;  %v1877_v32 = vld [vmem:[%s2108_s6] ss:$36 sps:$4 sm:$0xff]   ;;  %v1880_v34 = vld [vmem:[%s2108_s6 + $0x8] ss:$36 sps:$4 sm:$0xff]   ;;  %v1893_v45 = vld [vmem:[%s2108_s6 + $0x54] ss:$36 sps:$4 sm:$0xff]  }
  0x12   : > { %1670 = vmatprep.subr.bf16.mxu1 %v1858_v13  ;;  %v1879_v33 = vld [vmem:[%s2108_s6 + $0x4] ss:$36 sps:$4 sm:$0xff]   ;;  %v1882_v35 = vld [vmem:[%s2108_s6 + $0xc] ss:$36 sps:$4 sm:$0xff]   ;;  %v1901_v52 = vld [vmem:[%s2289_s1 + $0x158] sm:$0xff]  }
  0x13   : > { %1037 = vmatprep.mubr.bf16.mxu0 %v1879_v33  ;;  %1102 = vmatprep.mubr.bf16.mxu1 %v1882_v35  ;;  %v1887_v40 = vld [vmem:[%s2289_s1 + $0x148] sm:$0xff]   ;;  %v1896_v47 = vld [vmem:[%s2108_s6 + $0x50] ss:$36 sps:$4 sm:$0xff]   ;;  %v1902_v53 = vld [vmem:[%s2289_s1 + $0x1d8] sm:$0xff]  }
  0x14   : > { %1631 = vmatpush3.bf16.msra.mxu0 %v1859_v14  ;;  %v1888_v41 = vld [vmem:[%s2289_s1 + $0x1c8] sm:$0xff]   ;;  %v1897_v48 = vld [vmem:[%s2289_s1 + $0x150] sm:$0xff]   ;;  %v1903_v54 = vld [vmem:[%s2289_s1 + $0x118] sm:$0xff]  }
  0x15   : > { %1671 = vmatpush3.bf16.msra.mxu1 %v1860_v15  ;;  %1632 = vmatprep.subr.bf16.mxu0 %v1861_v16  ;;  %v1889_v42 = vld [vmem:[%s2289_s1 + $0x108] sm:$0xff]   ;;  %v1898_v49 = vld [vmem:[%s2289_s1 + $0x1d0] sm:$0xff]   ;;  %v1904_v55 = vld [vmem:[%s2289_s1 + $0x198] sm:$0xff]  }
  0x16   : > { %1672 = vmatprep.subr.bf16.mxu1 %v1862_v17  ;;  %v1890_v43 = vld [vmem:[%s2289_s1 + $0x188] sm:$0xff]   ;;  %v1899_v50 = vld [vmem:[%s2289_s1 + $0x110] sm:$0xff]   ;;  %v1907_v57 = vld [vmem:[%s2108_s6 + $0x9c] ss:$36 sps:$4 sm:$0xff]  }
  0x17   : > { %v1891_v44 = vld [vmem:[%s2108_s6 + $0x4c] ss:$36 sps:$4 sm:$0xff]   ;;  %v1905_v56 = vld [vmem:[%s2108_s6 + $0x94] ss:$36 sps:$4 sm:$0xff]   ;;  %v1911_v60 = vld [vmem:[%s2289_s1 + $0x160] sm:$0xff]  }
  0x18   : > { %1633 = vmatpush3.bf16.msra.mxu0 %v1863_v18  ;;  %v1895_v46 = vld [vmem:[%s2108_s6 + $0x48] ss:$36 sps:$4 sm:$0xff]   ;;  %v1900_v51 = vld [vmem:[%s2289_s1 + $0x190] sm:$0xff]   ;;  %v1910_v59 = vld [vmem:[%s2108_s6 + $0x98] ss:$36 sps:$4 sm:$0xff]  }
  0x19   : > { %1673 = vmatpush3.bf16.msra.mxu1 %v1864_v19  ;;  %1634 = vmatprep.subr.bf16.mxu0 %v1865_v20  ;;  %v1909_v58 = vld [vmem:[%s2108_s6 + $0x90] ss:$36 sps:$4 sm:$0xff]   ;;  %v1912_v61 = vld [vmem:[%s2289_s1 + $0x1e0] sm:$0xff]   ;;  %v1915_v0 = vld [vmem:[%s2289_s1 + $0x168] sm:$0xff]  }
  0x1a   : > { %1674 = vmatprep.subr.bf16.mxu1 %v1866_v21  ;;  %v1913_v62 = vld [vmem:[%s2289_s1 + $0x120] sm:$0xff]   ;;  %v1916_v1 = vld [vmem:[%s2289_s1 + $0x1e8] sm:$0xff]   ;;  %v1923_v6 = vld [vmem:[%s2108_s6 + $0xd8] ss:$36 sps:$4 sm:$0xff]  }
  0x1b   : > { %v1914_v63 = vld [vmem:[%s2289_s1 + $0x1a0] sm:$0xff]   ;;  %v1917_v2 = vld [vmem:[%s2289_s1 + $0x128] sm:$0xff]   ;;  %v1925_v8 = vld [vmem:[%s2289_s1 + $0x170] sm:$0xff]  }
  0x1c   : > { %1635 = vmatpush3.bf16.msra.mxu0 %v1867_v22  ;;  %v1918_v3 = vld [vmem:[%s2289_s1 + $0x1a8] sm:$0xff]   ;;  %v1919_v4 = vld [vmem:[%s2108_s6 + $0xdc] ss:$36 sps:$4 sm:$0xff]   ;;  %v1926_v9 = vld [vmem:[%s2289_s1 + $0x1f0] sm:$0xff]  }
  0x1d   : > { %1675 = vmatpush3.bf16.msra.mxu1 %v1868_v23  ;;  %1636 = vmatprep.subr.bf16.mxu0 %v1869_v24  ;;  %v1921_v5 = vld [vmem:[%s2108_s6 + $0xe4] ss:$36 sps:$4 sm:$0xff]   ;;  %v1927_v10 = vld [vmem:[%s2289_s1 + $0x130] sm:$0xff]   ;;  %v1929_v12 = vld [vmem:[%s2289_s1 + $0x178] sm:$0xff]  }
  0x1e   : > { %1676 = vmatprep.subr.bf16.mxu1 %v1870_v25  ;;  %v1924_v7 = vld [vmem:[%s2108_s6 + $0xe0] ss:$36 sps:$4 sm:$0xff]   ;;  %v1928_v11 = vld [vmem:[%s2289_s1 + $0x1b0] sm:$0xff]   ;;  %v1930_v13 = vld [vmem:[%s2289_s1 + $0x1f8] sm:$0xff]  }
  0x1f   : > { %v1931_v14 = vld [vmem:[%s2289_s1 + $0x138] sm:$0xff]   ;;  %v1933_v16 = vld [vmem:[%s2108_s6 + $0x10] ss:$36 sps:$4 sm:$0xff]   ;;  %v1939_v20 = vld [vmem:[%s2289_s1 + $0x200] sm:$0xff]  }
  0x20   : > { %1637 = vmatpush3.bf16.msra.mxu0 %v1871_v26  ;;  %v1932_v15 = vld [vmem:[%s2289_s1 + $0x1b8] sm:$0xff]   ;;  %v1940_v21 = vld [vmem:[%s2289_s1 + $0x208] sm:$0xff]   ;;  %v1946_v25 = vld [vmem:[%s2108_s6 + $0x60] ss:$36 sps:$4 sm:$0xff]  }
  0x21   : > { %1677 = vmatpush3.bf16.msra.mxu1 %v1872_v27  ;;  %1638 = vmatprep.subr.bf16.mxu0 %v1873_v28  ;;  %v1935_v17 = vld [vmem:[%s2108_s6 + $0x14] ss:$36 sps:$4 sm:$0xff]   ;;  %v1938_v19 = vld [vmem:[%s2108_s6 + $0x1c] ss:$36 sps:$4 sm:$0xff]   ;;  %v1943_v23 = vld [vmem:[%s2108_s6 + $0x64] ss:$36 sps:$4 sm:$0xff]  }
  0x22   : > { %1678 = vmatprep.subr.bf16.mxu1 %v1874_v29  ;;  %v1936_v18 = vld [vmem:[%s2108_s6 + $0x18] ss:$36 sps:$4 sm:$0xff]   ;;  %v1947_v26 = vld [vmem:[%s2289_s1 + $0x210] sm:$0xff]   ;;  %v1949_v27 = vld [vmem:[%s2108_s6 + $0xa4] ss:$36 sps:$4 sm:$0xff]  }
  0x23   : > { %v1941_v22 = vld [vmem:[%s2108_s6 + $0x5c] ss:$36 sps:$4 sm:$0xff]   ;;  %v1951_v28 = vld [vmem:[%s2108_s6 + $0xac] ss:$36 sps:$4 sm:$0xff]  }
  0x24   : > { %1639 = vmatpush3.bf16.msra.mxu0 %v1875_v30  ;;  %v1945_v24 = vld [vmem:[%s2108_s6 + $0x58] ss:$36 sps:$4 sm:$0xff]   ;;  %v1953_v30 = vld [vmem:[%s2108_s6 + $0xa0] ss:$36 sps:$4 sm:$0xff]   ;;  %v1957_v33 = vld [vmem:[%s2108_s6 + $0xec] ss:$36 sps:$4 sm:$0xff]  }
  0x25   : > { %1679 = vmatpush3.bf16.msra.mxu1 %v1876_v31  ;;  %1704 = vmatprep.subr.bf16.mxu0 %v1883_v36  ;;  %v1948_v29 = vld [vmem:[%s2289_s1 + $0x218] sm:$0xff]   ;;  %v1954_v31 = vld [vmem:[%s2108_s6 + $0xa8] ss:$36 sps:$4 sm:$0xff]  }
  0x26   : > { %1744 = vmatprep.subr.bf16.mxu1 %v1884_v37  ;;  %v1956_v35 = vld [vmem:[%s2289_s1 + $0x228] sm:$0xff]   ;;  %v1963_v37 = vld [vmem:[%s2289_s1 + $0x230] sm:$0xff]  }
  0x27   : > { %1038 = vmatmul.mubr.bf16.vlgmr.msra.gmra.mrb[0].mxu0 %v1877_v32  ;;  %v1955_v32 = vld [vmem:[%s2289_s1 + $0x220] sm:$0xff]   ;;  %v1961_v36 = vld [vmem:[%s2108_s6 + $0xe8] ss:$36 sps:$4 sm:$0xff]  }
  0x28   : > { %1103 = vmatmul.mubr.bf16.vlgmr.msra.gmra.mrb[0].mxu1 %v1880_v34  ;;  %1705 = vmatpush3.bf16.msra.mxu0 %v1885_v38  ;;  %v1959_v34 = vld [vmem:[%s2108_s6 + $0xf4] ss:$36 sps:$4 sm:$0xff]  }
  0x29   : > { %1745 = vmatpush3.bf16.msra.mxu1 %v1886_v39  ;;  %1706 = vmatprep.subr.bf16.mxu0 %v1887_v40  ;;  %v1962_v38 = vld [vmem:[%s2108_s6 + $0xf0] ss:$36 sps:$4 sm:$0xff]   ;;  %v1965_v39 = vld [vmem:[%s2108_s6 + $0x20] ss:$36 sps:$4 sm:$0xff]  }
  0x2a   : > { %1746 = vmatprep.subr.bf16.mxu1 %v1888_v41  ;;  %1045 = vmatprep.mubr.bf16.mxu0 %v1891_v44  ;;  %v1966_v40 = vld [vmem:[%s2108_s6 + $0xb0] ss:$36 sps:$4 sm:$0xff]   ;;  %v1964_v41 = vld [vmem:[%s2289_s1 + $0x238] sm:$0xff]  }
  0x2b   : > { %1110 = vmatprep.mubr.bf16.mxu1 %v1893_v45 }
  0x2c   : > { %1707 = vmatpush3.bf16.msra.mxu0 %v1889_v42  ;;  %v1967_v42 = vld [vmem:[%s2108_s6 + $0x68] ss:$36 sps:$4 sm:$0xff]  }
  0x2d   : > { %1747 = vmatpush3.bf16.msra.mxu1 %v1890_v43  ;;  %1708 = vmatprep.subr.bf16.mxu0 %v1897_v48  ;;  %v1968_v43 = vld [vmem:[%s2108_s6 + $0xf8] ss:$36 sps:$4 sm:$0xff]  }
  0x2e   : > { %1748 = vmatprep.subr.bf16.mxu1 %v1898_v49 }
  0x2f   : > { %1046 = vmatmul.mubr.bf16.gmra.mrb[4].mxu0 %v1895_v46 }
  0x30   : > { %1111 = vmatmul.mubr.bf16.gmra.mrb[4].mxu1 %v1896_v47  ;;  %1709 = vmatpush3.bf16.msra.mxu0 %v1899_v50 }
  0x31   : > { %1749 = vmatpush3.bf16.msra.mxu1 %v1900_v51  ;;  %1710 = vmatprep.subr.bf16.mxu0 %v1901_v52 }
  0x32   : > { %1750 = vmatprep.subr.bf16.mxu1 %v1902_v53  ;;  %1053 = vmatprep.mubr.bf16.mxu0 %v1905_v56 }
  0x33   : > { %1118 = vmatprep.mubr.bf16.mxu1 %v1907_v57 }
  0x34   : > { %1711 = vmatpush3.bf16.msra.mxu0 %v1903_v54 }
  0x35   : > { %1751 = vmatpush3.bf16.msra.mxu1 %v1904_v55  ;;  %1712 = vmatprep.subr.bf16.mxu0 %v1911_v60 }
  0x36   : > { %1752 = vmatprep.subr.bf16.mxu1 %v1912_v61 }
  0x37   : > { %1054 = vmatmul.mubr.bf16.gmra.mrb[8].mxu0 %v1909_v58 }
  0x38   : > { %1119 = vmatmul.mubr.bf16.gmra.mrb[8].mxu1 %v1910_v59  ;;  %1713 = vmatpush3.bf16.msra.mxu0 %v1913_v62 }
  0x39   : > { %1753 = vmatpush3.bf16.msra.mxu1 %v1914_v63  ;;  %1714 = vmatprep.subr.bf16.mxu0 %v1915_v0 }
  0x3a   : > { %1754 = vmatprep.subr.bf16.mxu1 %v1916_v1  ;;  %1061 = vmatprep.mubr.bf16.mxu0 %v1919_v4 }
  0x3b   : > { %1126 = vmatprep.mubr.bf16.mxu1 %v1921_v5 }
  0x3c   : > { %1715 = vmatpush3.bf16.msra.mxu0 %v1917_v2 }
  0x3d   : > { %1755 = vmatpush3.bf16.msra.mxu1 %v1918_v3  ;;  %1716 = vmatprep.subr.bf16.mxu0 %v1925_v8 }
  0x3e   : > { %1756 = vmatprep.subr.bf16.mxu1 %v1926_v9 }
  0x3f   : > { %1062 = vmatmul.mubr.bf16.gmra.mrb[12].mxu0 %v1923_v6 }
  0x40   : > { %1127 = vmatmul.mubr.bf16.gmra.mrb[12].mxu1 %v1924_v7  ;;  %1717 = vmatpush3.bf16.msra.mxu0 %v1927_v10 }
  0x41   : > { %1757 = vmatpush3.bf16.msra.mxu1 %v1928_v11  ;;  %1718 = vmatprep.subr.bf16.mxu0 %v1929_v12 }
  0x42   : > { %1758 = vmatprep.subr.bf16.mxu1 %v1930_v13  ;;  %1167 = vmatprep.mubr.bf16.mxu0 %v1935_v17 }
  0x43   : > { %1232 = vmatprep.mubr.bf16.mxu1 %v1938_v19 }
  0x44   : > { %1719 = vmatpush3.bf16.msra.mxu0 %v1931_v14 }
  0x45   : > { %1759 = vmatpush3.bf16.msra.mxu1 %v1932_v15  ;;  %1796 = vmatprep.subr.bf16.mxu0 %v1939_v20 }
  0x46   : > { %1820 = vmatprep.subr.bf16.mxu1 %v1939_v20 }
  0x47   : > { %1168 = vmatmul.mubr.bf16.vlgmr.msra.gmra.mrb[16].mxu0 %v1933_v16 }
  0x48   : > { %1233 = vmatmul.mubr.bf16.vlgmr.msra.gmra.mrb[16].mxu1 %v1936_v18  ;;  %1797 = vmatpush3.bf16.msra.mxu0 %v1939_v20 }
  0x49   : > { %1828 = vmatpush3.bf16.msra.mxu1 %v1939_v20  ;;  %1798 = vmatprep.subr.bf16.mxu0 %v1940_v21 }
  0x4a   : > { %1821 = vmatprep.subr.bf16.mxu1 %v1940_v21  ;;  %1175 = vmatprep.mubr.bf16.mxu0 %v1941_v22 }
  0x4b   : > { %1240 = vmatprep.mubr.bf16.mxu1 %v1943_v23 }
  0x4c   : > { %1799 = vmatpush3.bf16.msra.mxu0 %v1940_v21 }
  0x4d   : > { %1829 = vmatpush3.bf16.msra.mxu1 %v1940_v21  ;;  %1800 = vmatprep.subr.bf16.mxu0 %v1947_v26 }
  0x4e   : > { %1822 = vmatprep.subr.bf16.mxu1 %v1947_v26 }
  0x4f   : > { %1176 = vmatmul.mubr.bf16.gmra.mrb[20].mxu0 %v1945_v24 }
  0x50   : > { %1241 = vmatmul.mubr.bf16.gmra.mrb[20].mxu1 %v1946_v25  ;;  %1183 = vmatprep.mubr.bf16.mxu0 %v1949_v27 }
  0x51   : > { %1801 = vmatpush3.bf16.msra.mxu0 %v1947_v26  ;;  %1248 = vmatprep.mubr.bf16.mxu1 %v1951_v28 }
  0x52   : > { %1830 = vmatpush3.bf16.msra.mxu1 %v1947_v26  ;;  %1802 = vmatprep.subr.bf16.mxu0 %v1948_v29 }
  0x53   : > { %1823 = vmatprep.subr.bf16.mxu1 %v1948_v29 }
  0x55   : > { %1803 = vmatpush3.bf16.msra.mxu0 %v1948_v29 }
  0x56   : > { %1831 = vmatpush3.bf16.msra.mxu1 %v1948_v29  ;;  %1804 = vmatprep.subr.bf16.mxu0 %v1955_v32 }
  0x57   : > { %1184 = vmatmul.mubr.bf16.gmra.mrb[24].mxu0 %v1953_v30  ;;  %1824 = vmatprep.subr.bf16.mxu1 %v1955_v32 }
  0x58   : > { %1249 = vmatmul.mubr.bf16.gmra.mrb[24].mxu1 %v1954_v31  ;;  %1191 = vmatprep.mubr.bf16.mxu0 %v1957_v33 }
  0x59   : > { %1805 = vmatpush3.bf16.msra.mxu0 %v1955_v32  ;;  %1256 = vmatprep.mubr.bf16.mxu1 %v1959_v34 }
  0x5a   : > { %1832 = vmatpush3.bf16.msra.mxu1 %v1955_v32  ;;  %1806 = vmatprep.subr.bf16.mxu0 %v1956_v35 }
  0x5b   : > { %1825 = vmatprep.subr.bf16.mxu1 %v1956_v35 }
  0x5d   : > { %1807 = vmatpush3.bf16.msra.mxu0 %v1956_v35 }
  0x5e   : > { %1833 = vmatpush3.bf16.msra.mxu1 %v1956_v35  ;;  %1808 = vmatprep.subr.bf16.mxu0 %v1963_v37 }
  0x5f   : > { %1192 = vmatmul.mubr.bf16.gmra.mrb[28].mxu0 %v1961_v36  ;;  %1826 = vmatprep.subr.bf16.mxu1 %v1963_v37 }
  0x60   : > { %1257 = vmatmul.mubr.bf16.gmra.mrb[28].mxu1 %v1962_v38  ;;  %1812 = vmatprep.mubr.bf16.mxu0 %v1965_v39 }
  0x61   : > { %1809 = vmatpush3.bf16.msra.mxu0 %v1963_v37  ;;  %1816 = vmatprep.mubr.bf16.mxu1 %v1966_v40 }
  0x62   : > { %1834 = vmatpush3.bf16.msra.mxu1 %v1963_v37  ;;  %1810 = vmatprep.subr.bf16.mxu0 %v1964_v41 }
  0x63   : > { %1827 = vmatprep.subr.bf16.mxu1 %v1964_v41 }
  0x65   : > { %1811 = vmatpush3.bf16.msra.mxu0 %v1964_v41 }
  0x66   : > { %1835 = vmatpush3.bf16.msra.mxu1 %v1964_v41 }
  0x68   : > { %1813 = vmatmul.mubr.bf16.vlgmr.msra.gmra.mrb[32].mxu0 %v1967_v42 }
  0x69   : > { %1817 = vmatmul.mubr.bf16.vlgmr.msra.gmra.mrb[32].mxu1 %v1968_v43 }
  0xfa   : > { %v1640_v44 = vpop.f32.mrb[0].mxu0 }
  0xfb   : > { %v1680_v45 = vpop.f32.mrb[0].mxu1  ;;  %v1641_v46 = vpop.f32.mrb[1].mxu0 }
  0xfc   : > { %v1642_v47 = vadd.f32 %v1641_v46, %v1640_v44  ;;  %v1681_v48 = vpop.f32.mrb[1].mxu1  ;;  %v1643_v49 = vpop.f32.mrb[2].mxu0 }
  0xfd   : > { %v1682_v50 = vadd.f32 %v1681_v48, %v1680_v45  ;;  %v1683_v51 = vpop.f32.mrb[2].mxu1  ;;  %v1644_v52 = vpop.f32.mrb[3].mxu0 }
  0xfe   : > { %v1645_v53 = vadd.f32 %v1644_v52, %v1643_v49  ;;  %v1684_v54 = vpop.f32.mrb[3].mxu1 }
  0xff   : > { %v1105_v55 = vadd.f32 %v1682_v50, %v1642_v47  ;;  %v1685_v56 = vadd.f32 %v1684_v54, %v1683_v51 }
 0x101   : > { %v1108_v57 = vadd.f32 %v1685_v56, %v1645_v53 }
 0x102   : > { %v1646_v58 = vpop.f32.mrb[4].mxu0 }
 0x103   : > { %v1686_v59 = vpop.f32.mrb[4].mxu1  ;;  %v1647_v60 = vpop.f32.mrb[5].mxu0 }
 0x104   : > { %v1648_v61 = vadd.f32 %v1647_v60, %v1646_v58  ;;  %v1687_v62 = vpop.f32.mrb[5].mxu1  ;;  %v1649_v63 = vpop.f32.mrb[6].mxu0 }
 0x105   : > { %v1688_v0 = vadd.f32 %v1687_v62, %v1686_v59  ;;  %v1689_v1 = vpop.f32.mrb[6].mxu1  ;;  %v1650_v2 = vpop.f32.mrb[7].mxu0 }
 0x106   : > { %v1651_v3 = vadd.f32 %v1650_v2, %v1649_v63  ;;  %v1690_v4 = vpop.f32.mrb[7].mxu1 }
 0x107   : > { %v1113_v5 = vadd.f32 %v1688_v0, %v1648_v61  ;;  %v1691_v6 = vadd.f32 %v1690_v4, %v1689_v1 }
 0x109   : > { %v1116_v7 = vadd.f32 %v1691_v6, %v1651_v3 }
 0x10a   : > { %v1652_v8 = vpop.f32.mrb[8].mxu0 }
 0x10b   : > { %v1692_v9 = vpop.f32.mrb[8].mxu1  ;;  %v1653_v10 = vpop.f32.mrb[9].mxu0 }
 0x10c   : > { %v1654_v11 = vadd.f32 %v1653_v10, %v1652_v8  ;;  %v1693_v12 = vpop.f32.mrb[9].mxu1  ;;  %v1655_v13 = vpop.f32.mrb[10].mxu0 }
 0x10d   : > { %v1694_v14 = vadd.f32 %v1693_v12, %v1692_v9  ;;  %v1695_v15 = vpop.f32.mrb[10].mxu1  ;;  %v1656_v16 = vpop.f32.mrb[11].mxu0 }
 0x10e   : > { %v1657_v17 = vadd.f32 %v1656_v16, %v1655_v13  ;;  %v1696_v18 = vpop.f32.mrb[11].mxu1 }
 0x10f   : > { %v1121_v19 = vadd.f32 %v1694_v14, %v1654_v11  ;;  %v1697_v20 = vadd.f32 %v1696_v18, %v1695_v15 }
 0x111   : > { %v1124_v21 = vadd.f32 %v1697_v20, %v1657_v17 }
 0x112   : > { %v1658_v22 = vpop.f32.mrb[12].mxu0 }
 0x113   : > { %v1698_v23 = vpop.f32.mrb[12].mxu1  ;;  %v1659_v24 = vpop.f32.mrb[13].mxu0 }
 0x114   : > { %v1699_v25 = vpop.f32.mrb[13].mxu1  ;;  %v1660_v26 = vadd.f32 %v1659_v24, %v1658_v22  ;;  %v1661_v28 = vpop.f32.mrb[14].mxu0 }
 0x115   : > { %v1700_v27 = vadd.f32 %v1699_v25, %v1698_v23  ;;  %v1701_v29 = vpop.f32.mrb[14].mxu1  ;;  %v1662_v30 = vpop.f32.mrb[15].mxu0 }
 0x116   : > { %v1702_v31 = vpop.f32.mrb[15].mxu1  ;;  %v1663_v33 = vadd.f32 %v1662_v30, %v1661_v28 }
 0x117   : > { %v1129_v32 = vadd.f32 %v1700_v27, %v1660_v26  ;;  %v1703_v34 = vadd.f32 %v1702_v31, %v1701_v29 }
 0x119   : > { %v1132_v35 = vadd.f32 %v1703_v34, %v1663_v33 }
 0x11a   : > { %v1720_v36 = vpop.f32.mrb[16].mxu0 }
 0x11b   : > { %v1721_v37 = vpop.f32.mrb[17].mxu0  ;;  %v1760_v38 = vpop.f32.mrb[16].mxu1 }
 0x11c   : > { %v1722_v39 = vadd.f32 %v1721_v37, %v1720_v36  ;;  %v1723_v40 = vpop.f32.mrb[18].mxu0  ;;  %v1761_v41 = vpop.f32.mrb[17].mxu1 }
 0x11d   : > { %v1724_v42 = vpop.f32.mrb[19].mxu0  ;;  %v1762_v44 = vadd.f32 %v1761_v41, %v1760_v38  ;;  %v1763_v45 = vpop.f32.mrb[18].mxu1 }
 0x11e   : > { %v1170_v43 = vadd.f32 %v1722_v39, %v1105_v55  ;;  %v1725_v46 = vadd.f32 %v1724_v42, %v1723_v40  ;;  %v1764_v47 = vpop.f32.mrb[19].mxu1  ;;  %v1581_v42 = vld [vmem:[%s2290_s2] ss:$0 sm:$0xff] }
 0x11f   : > { %v1765_v49 = vadd.f32 %v1764_v47, %v1763_v45 }
 0x120   : > { %v1173_v48 = vadd.f32 %v1725_v46, %v1108_v57  ;;  %v1235_v50 = vadd.f32 %v1762_v44, %v1170_v43 }
 0x122   : > { %v1726_v51 = vpop.f32.mrb[20].mxu0  ;;  %v2272_v52 = vadd.f32 %v1765_v49, %v1173_v48 }
 0x123   : > { %v1727_v53 = vpop.f32.mrb[21].mxu0  ;;  %v1766_v54 = vpop.f32.mrb[20].mxu1 }
 0x124   : > { %v1728_v56 = vadd.f32 %v1727_v53, %v1726_v51  ;;  %v1729_v58 = vpop.f32.mrb[22].mxu0  ;;  %v1767_v59 = vpop.f32.mrb[21].mxu1 }
 0x125   : > { %v1730_v60 = vpop.f32.mrb[23].mxu0  ;;  %v1768_v62 = vadd.f32 %v1767_v59, %v1766_v54  ;;  %v1769_v63 = vpop.f32.mrb[22].mxu1 }
 0x126   : > { %v1178_v61 = vadd.f32 %v1728_v56, %v1113_v5  ;;  %v1731_v55 = vadd.f32 %v1730_v60, %v1729_v58  ;;  %v1770_v0 = vpop.f32.mrb[23].mxu1 }
 0x127   : > { %v1771_v2 = vadd.f32 %v1770_v0, %v1769_v63 }
 0x128   : > { %v1181_v1 = vadd.f32 %v1731_v55, %v1116_v7  ;;  %v1243_v3 = vadd.f32 %v1768_v62, %v1178_v61 }
 0x12a   : > { %v1732_v57 = vpop.f32.mrb[24].mxu0  ;;  %v1246_v4 = vadd.f32 %v1771_v2, %v1181_v1 }
 0x12b   : > { %v1733_v6 = vpop.f32.mrb[25].mxu0  ;;  %v1772_v8 = vpop.f32.mrb[24].mxu1 }
 0x12c   : > { %v1734_v9 = vadd.f32 %v1733_v6, %v1732_v57  ;;  %v1735_v10 = vpop.f32.mrb[26].mxu0  ;;  %v1773_v11 = vpop.f32.mrb[25].mxu1 }
 0x12d   : > { %v1736_v12 = vpop.f32.mrb[27].mxu0  ;;  %v1774_v14 = vadd.f32 %v1773_v11, %v1772_v8  ;;  %v1775_v15 = vpop.f32.mrb[26].mxu1 }
 0x12e   : > { %v1186_v13 = vadd.f32 %v1734_v9, %v1121_v19  ;;  %v1737_v16 = vadd.f32 %v1736_v12, %v1735_v10  ;;  %v1776_v5 = vpop.f32.mrb[27].mxu1 }
 0x12f   : > { %v1777_v18 = vadd.f32 %v1776_v5, %v1775_v15 }
 0x130   : > { %v1189_v17 = vadd.f32 %v1737_v16, %v1124_v21  ;;  %v1251_v20 = vadd.f32 %v1774_v14, %v1186_v13 }
 0x132   : > { %v1738_v22 = vpop.f32.mrb[28].mxu0  ;;  %v1254_v7 = vadd.f32 %v1777_v18, %v1189_v17 }
 0x133   : > { %v1739_v23 = vpop.f32.mrb[29].mxu0  ;;  %v1778_v24 = vpop.f32.mrb[28].mxu1 }
 0x134   : > { %v1740_v25 = vadd.f32 %v1739_v23, %v1738_v22  ;;  %v1741_v26 = vpop.f32.mrb[30].mxu0  ;;  %v1779_v27 = vpop.f32.mrb[29].mxu1 }
 0x135   : > { %v1742_v28 = vpop.f32.mrb[31].mxu0  ;;  %v1780_v30 = vadd.f32 %v1779_v27, %v1778_v24  ;;  %v1781_v31 = vpop.f32.mrb[30].mxu1 }
 0x136   : > { %v1194_v29 = vadd.f32 %v1740_v25, %v1129_v32  ;;  %v1743_v33 = vadd.f32 %v1742_v28, %v1741_v26  ;;  %v1782_v19 = vpop.f32.mrb[31].mxu1 }
 0x137   : > { %v1783_v36 = vadd.f32 %v1782_v19, %v1781_v31 }
 0x138   : > { %v1197_v34 = vadd.f32 %v1743_v33, %v1132_v35  ;;  %v1259_v37 = vadd.f32 %v1780_v30, %v1194_v29 }
 0x13a   : > { %v1262_v38 = vadd.f32 %v1783_v36, %v1197_v34 }
 0x13b   : > { %v1814_v21 = vpop.f32.mrb[32].mxu0 }
 0x13c   : > { %v1308_v39 = vadd.f32 %v1814_v21, %v1243_v3  ;;  %v1818_v40 = vpop.f32.mrb[32].mxu1  ;;  %v1299_v41 = vpop.f32.mrb[33].mxu0 }
 0x13d   : > { %v1324_v43 = vadd.f32 %v1818_v40, %v1259_v37  ;;  %v1300_v44 = vadd.f32 %v1299_v41, %v1235_v50  ;;  %v1315_v45 = vpop.f32.mrb[33].mxu1  ;;  %v1815_v32 = vpop.f32.mrb[34].mxu0  ;;  %v1582_v50 = vld [vmem:[%s2291_s3] ss:$0 sm:$0xff] }
 0x13e   : > { %v1332_v46 = vmax.f32 %v1308_v39, 0.0  ;;  %v1316_v47 = vadd.f32 %v1315_v45, %v1251_v20  ;;  %v1311_v48 = vadd.f32 %v1815_v32, %v1246_v4  ;;  %v1819_v49 = vpop.f32.mrb[34].mxu1  ;;  %v1302_v35 = vpop.f32.mrb[35].mxu0 }
 0x13f   : > { %v1336_v51 = vmax.f32 %v1324_v43, 0.0  ;;  %v1330_v53 = vmax.f32 %v1300_v44, 0.0  ;;  %v1327_v54 = vadd.f32 %v1819_v49, %v1262_v38  ;;  %v1303_v56 = vadd.f32 %v1302_v35, %v2272_v52  ;;  %v1318_v58 = vpop.f32.mrb[35].mxu1 }
 0x140   : > { %v1347_v59 = vmul.f32 %v1581_v42, %v1332_v46  ;;  %v1334_v60 = vmax.f32 %v1316_v47, 0.0  ;;  %v1333_v61 = vmax.f32 %v1311_v48, 0.0  ;;  %v1319_v62 = vadd.f32 %v1318_v58, %v1254_v7 }
 0x141   : > { %v1351_v63 = vmul.f32 %v1581_v42, %v1336_v51  ;;  %v1345_v55 = vmul.f32 %v1581_v42, %v1330_v53  ;;  %v1337_v0 = vmax.f32 %v1327_v54, 0.0  ;;  %v1331_v1 = vmax.f32 %v1303_v56, 0.0 }
 0x142   : > { %v1349_v2 = vmul.f32 %v1581_v42, %v1334_v60  ;;  %v1348_v3 = vmul.f32 %v1581_v42, %v1333_v61  ;;  %v1335_v57 = vmax.f32 %v1319_v62, 0.0  ;;  %v1362_v52 = vadd.f32 %v1582_v50, %v1347_v59 }
 0x143   : > { %v1352_v4 = vmul.f32 %v1581_v42, %v1337_v0  ;;  %v1346_v6 = vmul.f32 %v1581_v42, %v1331_v1  ;;  %v1366_v10 = vadd.f32 %v1582_v50, %v1351_v63  ;;  %v1360_v11 = vadd.f32 %v1582_v50, %v1345_v55 }
 0x144   : > { %v1363_v8 = vadd.f32 %v1582_v50, %v1348_v3  ;;  %v1350_v9 = vmul.f32 %v1581_v42, %v1335_v57  ;;  %v1364_v14 = vadd.f32 %v1582_v50, %v1349_v2 }
 0x145   : > { %v1367_v12 = vadd.f32 %v1582_v50, %v1352_v4  ;;  %v1361_v13 = vadd.f32 %v1582_v50, %v1346_v6 }
 0x146   : > { %v1609_v15 = vpack.c.bf16 %v1363_v8, %v1362_v52  ;;  %v1365_v16 = vadd.f32 %v1582_v50, %v1350_v9 }
 0x147   : > { %v1619_v5 = vpack.c.bf16 %v1367_v12, %v1366_v10  ;;  %v1604_v17 = vpack.c.bf16 %v1361_v13, %v1360_v11 }
 0x148   : > { %1621 = vst [vmem:[%s202_s5 + $0x8] sm:$0xff] %v1609_v15   ;;  %v1614_v18 = vpack.c.bf16 %v1365_v16, %v1364_v14 }
 0x149   : > { %1623 = vst [vmem:[%s202_s5 + $0x18] sm:$0xff] %v1619_v5   ;;  %1605 = vst [vmem:[%s202_s5] sm:$0xff] %v1604_v17  }
 0x14a   : > { %1622 = vst [vmem:[%s202_s5 + $0x10] sm:$0xff] %v1614_v18  }
 0x14b PF: > { %s14_s15 = sadd.s32 1, %s1975_s15  }
 0x14c   : > { %p11_p4 = scmp.ge.s32.totalorder %s14_s15, 4  }
 0x14e   :  { %13 = sbr.rel (!%p11_p4) target bundleno = 1 (0x1), region = 66 }

// kernel: magical_cnn_forward.5
= control target key start
LH: loop header
LB: loop body
LE: loop exit
PB: predicated region body
PF: predicated region fallthrough
CT: control target
= control target key end

     0   :  { %s4285_s0 = inlined_call_operand.vmem [shape: bf16[1,32,1152], index: 0, kind: input, shape index: {}]   ;;  %s4286_s1 = inlined_call_operand.vmem [shape: bf16[1152,128], index: 1, kind: input, shape index: {}]   ;;  %s4287_s2 = inlined_call_operand.vmem [shape: f32[1,128], index: 2, kind: input, shape index: {}]   ;;  %s4288_s3 = inlined_call_operand.vmem [shape: f32[1,128], index: 3, kind: input, shape index: {}]   ;;  %s4289_s4 = inlined_call_operand.vmem [shape: bf16[1152,128], index: 4, kind: input, shape index: {}]   ;;  %s4290_s5 = inlined_call_operand.vmem [shape: f32[1,128], index: 5, kind: input, shape index: {}]   ;;  %s4291_s6 = inlined_call_operand.vmem [shape: f32[1,128], index: 6, kind: input, shape index: {}]   ;;  %s4292_s7 = inlined_call_operand.vmem [shape: bf16[512,128], index: 7, kind: input, shape index: {}]   ;;  %s4293_s8 = inlined_call_operand.vmem [shape: f32[1,128], index: 8, kind: input, shape index: {}]   ;;  %s4294_s9 = inlined_call_operand.vmem [shape: f32[1,128], index: 9, kind: input, shape index: {}]   ;;  %s4295_s10 = inlined_call_operand.vmem [shape: bf16[128,256], index: 10, kind: input, shape index: {}]   ;;  %s4296_s11 = inlined_call_operand.vmem [shape: f32[1,256], index: 11, kind: input, shape index: {}]   ;;  %s4297_s12 = inlined_call_operand.vmem [shape: bf16[256,128], index: 12, kind: input, shape index: {}]   ;;  %s4298_s13 = inlined_call_operand.vmem [shape: f32[1,128], index: 13, kind: input, shape index: {}]   ;;  %s4299_s14 = inlined_call_operand.hbm [shape: f32[1,2,128], index: 14, kind: output, shape index: {}]  }
   0x1   :  { %v3173_v0 = vld [vmem:[%s4286_s1 + $0x40] sm:$0xff]   ;;  %v3177_v4 = vld [vmem:[%s4286_s1 + $0x48] sm:$0xff]   ;;  %v3181_v8 = vld [vmem:[%s4286_s1 + $0x50] sm:$0xff]  }
   0x2   :  { %v3174_v1 = vld [vmem:[%s4286_s1 + $0xc0] sm:$0xff]   ;;  %2844 = vmatprep.subr.bf16.mxu0 %v3173_v0  ;;  %v3178_v5 = vld [vmem:[%s4286_s1 + $0xc8] sm:$0xff]   ;;  %v3182_v9 = vld [vmem:[%s4286_s1 + $0xd0] sm:$0xff]  }
   0x3   :  { %v3175_v2 = vld [vmem:[%s4286_s1] sm:$0xff]   ;;  %2872 = vmatprep.subr.bf16.mxu1 %v3174_v1  ;;  %v3179_v6 = vld [vmem:[%s4286_s1 + $0x8] sm:$0xff]   ;;  %v3183_v10 = vld [vmem:[%s4286_s1 + $0x10] sm:$0xff]  }
   0x4   :  { %v3176_v3 = vld [vmem:[%s4286_s1 + $0x80] sm:$0xff]   ;;  %2845 = vmatpush3.bf16.msra.mxu0 %v3175_v2  ;;  %v3180_v7 = vld [vmem:[%s4286_s1 + $0x88] sm:$0xff]   ;;  %v3184_v11 = vld [vmem:[%s4286_s1 + $0x90] sm:$0xff]  }
   0x5   :  { %2873 = vmatpush3.bf16.msra.mxu1 %v3176_v3  ;;  %2846 = vmatprep.subr.bf16.mxu0 %v3177_v4  ;;  %v3185_v12 = vld [vmem:[%s4286_s1 + $0x58] sm:$0xff]   ;;  %v3189_v16 = vld [vmem:[%s4286_s1 + $0x60] sm:$0xff]   ;;  %v3193_v20 = vld [vmem:[%s4286_s1 + $0x68] sm:$0xff]  }
   0x6   :  { %2874 = vmatprep.subr.bf16.mxu1 %v3178_v5  ;;  %v3186_v13 = vld [vmem:[%s4286_s1 + $0xd8] sm:$0xff]   ;;  %v3190_v17 = vld [vmem:[%s4286_s1 + $0xe0] sm:$0xff]   ;;  %v3194_v21 = vld [vmem:[%s4286_s1 + $0xe8] sm:$0xff]  }
   0x7   :  { %v3187_v14 = vld [vmem:[%s4286_s1 + $0x18] sm:$0xff]   ;;  %v3191_v18 = vld [vmem:[%s4286_s1 + $0x20] sm:$0xff]   ;;  %v3195_v22 = vld [vmem:[%s4286_s1 + $0x28] sm:$0xff]  }
   0x8   :  { %2847 = vmatpush3.bf16.msra.mxu0 %v3179_v6  ;;  %v3188_v15 = vld [vmem:[%s4286_s1 + $0x98] sm:$0xff]   ;;  %v3192_v19 = vld [vmem:[%s4286_s1 + $0xa0] sm:$0xff]   ;;  %v3196_v23 = vld [vmem:[%s4286_s1 + $0xa8] sm:$0xff]  }
   0x9   :  { %2875 = vmatpush3.bf16.msra.mxu1 %v3180_v7  ;;  %2848 = vmatprep.subr.bf16.mxu0 %v3181_v8  ;;  %v3197_v24 = vld [vmem:[%s4286_s1 + $0x70] sm:$0xff]   ;;  %v3201_v28 = vld [vmem:[%s4286_s1 + $0x78] sm:$0xff]   ;;  %v3205_v32 = vld [vmem:[%s4285_s0] ss:$36 sps:$4 sm:$0xff]  }
   0xa   :  { %2876 = vmatprep.subr.bf16.mxu1 %v3182_v9  ;;  %v3198_v25 = vld [vmem:[%s4286_s1 + $0xf0] sm:$0xff]   ;;  %v3202_v29 = vld [vmem:[%s4286_s1 + $0xf8] sm:$0xff]   ;;  %v3207_v33 = vld [vmem:[%s4285_s0 + $0x4] ss:$36 sps:$4 sm:$0xff]  }
   0xb   :  { %v3199_v26 = vld [vmem:[%s4286_s1 + $0x30] sm:$0xff]   ;;  %v3203_v30 = vld [vmem:[%s4286_s1 + $0x38] sm:$0xff]   ;;  %v3208_v34 = vld [vmem:[%s4285_s0 + $0x8] ss:$36 sps:$4 sm:$0xff]   ;;  %769 = vmatprep.mubr.bf16.mxu0 %v3207_v33 }
   0xc   :  { %2849 = vmatpush3.bf16.msra.mxu0 %v3183_v10  ;;  %v3200_v27 = vld [vmem:[%s4286_s1 + $0xb0] sm:$0xff]   ;;  %v3204_v31 = vld [vmem:[%s4286_s1 + $0xb8] sm:$0xff]   ;;  %v3211_v36 = vld [vmem:[%s4286_s1 + $0x140] sm:$0xff]  }
   0xd   :  { %2877 = vmatpush3.bf16.msra.mxu1 %v3184_v11  ;;  %2850 = vmatprep.subr.bf16.mxu0 %v3185_v12  ;;  %v3210_v35 = vld [vmem:[%s4285_s0 + $0xc] ss:$36 sps:$4 sm:$0xff]   ;;  %v3212_v37 = vld [vmem:[%s4286_s1 + $0x100] sm:$0xff]   ;;  %v3223_v48 = vld [vmem:[%s4286_s1 + $0x158] sm:$0xff]  }
   0xe   :  { %2878 = vmatprep.subr.bf16.mxu1 %v3186_v13  ;;  %818 = vmatprep.mubr.bf16.mxu1 %v3210_v35  ;;  %v3213_v38 = vld [vmem:[%s4286_s1 + $0x1c0] sm:$0xff]   ;;  %v3215_v40 = vld [vmem:[%s4286_s1 + $0x148] sm:$0xff]   ;;  %v3219_v44 = vld [vmem:[%s4286_s1 + $0x150] sm:$0xff]  }
   0xf   :  { %v3214_v39 = vld [vmem:[%s4286_s1 + $0x180] sm:$0xff]   ;;  %v3216_v41 = vld [vmem:[%s4286_s1 + $0x108] sm:$0xff]   ;;  %v3220_v45 = vld [vmem:[%s4286_s1 + $0x110] sm:$0xff]  }
  0x10   :  { %2851 = vmatpush3.bf16.msra.mxu0 %v3187_v14  ;;  %v3217_v42 = vld [vmem:[%s4286_s1 + $0x1c8] sm:$0xff]   ;;  %v3221_v46 = vld [vmem:[%s4286_s1 + $0x1d0] sm:$0xff]   ;;  %v3224_v49 = vld [vmem:[%s4286_s1 + $0x118] sm:$0xff]  }
  0x11   :  { %2879 = vmatpush3.bf16.msra.mxu1 %v3188_v15  ;;  %2852 = vmatprep.subr.bf16.mxu0 %v3189_v16  ;;  %v3218_v43 = vld [vmem:[%s4286_s1 + $0x188] sm:$0xff]   ;;  %v3222_v47 = vld [vmem:[%s4286_s1 + $0x190] sm:$0xff]   ;;  %v3225_v50 = vld [vmem:[%s4286_s1 + $0x1d8] sm:$0xff]  }
  0x12   :  { %2880 = vmatprep.subr.bf16.mxu1 %v3190_v17  ;;  %v3226_v51 = vld [vmem:[%s4286_s1 + $0x198] sm:$0xff]   ;;  %v3227_v52 = vld [vmem:[%s4286_s1 + $0x160] sm:$0xff]   ;;  %v3231_v56 = vld [vmem:[%s4286_s1 + $0x168] sm:$0xff]  }
  0x13   :  { %v3228_v53 = vld [vmem:[%s4286_s1 + $0x120] sm:$0xff]   ;;  %v3232_v57 = vld [vmem:[%s4285_s0 + $0x4c] ss:$36 sps:$4 sm:$0xff]   ;;  %v3234_v58 = vld [vmem:[%s4285_s0 + $0x54] ss:$36 sps:$4 sm:$0xff]  }
  0x14   :  { %2853 = vmatpush3.bf16.msra.mxu0 %v3191_v18  ;;  %v3229_v54 = vld [vmem:[%s4286_s1 + $0x1e0] sm:$0xff]   ;;  %v3236_v59 = vld [vmem:[%s4286_s1 + $0x128] sm:$0xff]   ;;  %v3238_v61 = vld [vmem:[%s4285_s0 + $0x50] ss:$36 sps:$4 sm:$0xff]  }
  0x15   :  { %2881 = vmatpush3.bf16.msra.mxu1 %v3192_v19  ;;  %2854 = vmatprep.subr.bf16.mxu0 %v3193_v20  ;;  %v3230_v55 = vld [vmem:[%s4286_s1 + $0x1a0] sm:$0xff]   ;;  %v3237_v60 = vld [vmem:[%s4285_s0 + $0x48] ss:$36 sps:$4 sm:$0xff]   ;;  %v3241_v0 = vld [vmem:[%s4286_s1 + $0x170] sm:$0xff]  }
  0x16   :  { %2882 = vmatprep.subr.bf16.mxu1 %v3194_v21  ;;  %v3239_v62 = vld [vmem:[%s4286_s1 + $0x1e8] sm:$0xff]   ;;  %v3242_v1 = vld [vmem:[%s4286_s1 + $0x130] sm:$0xff]   ;;  %v3245_v4 = vld [vmem:[%s4286_s1 + $0x178] sm:$0xff]  }
  0x17   :  { %v3240_v63 = vld [vmem:[%s4286_s1 + $0x1a8] sm:$0xff]   ;;  %v3243_v2 = vld [vmem:[%s4286_s1 + $0x1f0] sm:$0xff]   ;;  %v3246_v5 = vld [vmem:[%s4286_s1 + $0x138] sm:$0xff]  }
  0x18   :  { %2855 = vmatpush3.bf16.msra.mxu0 %v3195_v22  ;;  %v3244_v3 = vld [vmem:[%s4286_s1 + $0x1b0] sm:$0xff]   ;;  %v3247_v6 = vld [vmem:[%s4286_s1 + $0x1f8] sm:$0xff]   ;;  %v3252_v10 = vld [vmem:[%s4286_s1 + $0x200] sm:$0xff]  }
  0x19   :  { %2883 = vmatpush3.bf16.msra.mxu1 %v3196_v23  ;;  %2856 = vmatprep.subr.bf16.mxu0 %v3197_v24  ;;  %v3248_v7 = vld [vmem:[%s4285_s0 + $0x10] ss:$36 sps:$4 sm:$0xff]   ;;  %v3251_v9 = vld [vmem:[%s4286_s1 + $0x1b8] sm:$0xff]   ;;  %v3256_v13 = vld [vmem:[%s4286_s1 + $0x208] sm:$0xff]  }
  0x1a   :  { %2884 = vmatprep.subr.bf16.mxu1 %v3198_v25  ;;  %v3250_v8 = vld [vmem:[%s4285_s0 + $0x14] ss:$36 sps:$4 sm:$0xff]   ;;  %v3255_v12 = vld [vmem:[%s4285_s0 + $0x1c] ss:$36 sps:$4 sm:$0xff]   ;;  %v3261_v17 = vld [vmem:[%s4285_s0 + $0x64] ss:$36 sps:$4 sm:$0xff]  }
  0x1b   :  { %v3253_v11 = vld [vmem:[%s4285_s0 + $0x18] ss:$36 sps:$4 sm:$0xff]   ;;  %v3260_v16 = vld [vmem:[%s4286_s1 + $0x210] sm:$0xff]   ;;  %v3263_v18 = vld [vmem:[%s4285_s0 + $0x60] ss:$36 sps:$4 sm:$0xff]  }
  0x1c   :  { %2857 = vmatpush3.bf16.msra.mxu0 %v3199_v26  ;;  %v3257_v14 = vld [vmem:[%s4285_s0 + $0x5c] ss:$36 sps:$4 sm:$0xff]   ;;  %v3266_v22 = vld [vmem:[%s4286_s1 + $0x228] sm:$0xff]   ;;  %v3267_v23 = vld [vmem:[%s4286_s1 + $0x230] sm:$0xff]  }
  0x1d   :  { %2885 = vmatpush3.bf16.msra.mxu1 %v3200_v27  ;;  %2858 = vmatprep.subr.bf16.mxu0 %v3201_v28  ;;  %v3259_v15 = vld [vmem:[%s4285_s0 + $0x58] ss:$36 sps:$4 sm:$0xff]   ;;  %v3265_v20 = vld [vmem:[%s4286_s1 + $0x220] sm:$0xff]   ;;  %v3270_v25 = vld [vmem:[%s4285_s0 + $0x68] ss:$36 sps:$4 sm:$0xff]  }
  0x1e   :  { %2886 = vmatprep.subr.bf16.mxu1 %v3202_v29  ;;  %v3264_v19 = vld [vmem:[%s4286_s1 + $0x218] sm:$0xff]   ;;  %v3269_v21 = vld [vmem:[%s4285_s0 + $0x20] ss:$36 sps:$4 sm:$0xff]   ;;  %v3278_v33 = vld [vmem:[%s4289_s4 + $0x88] sm:$0xff]  }
  0x1f   :  { %v3268_v24 = vld [vmem:[%s4286_s1 + $0x238] sm:$0xff]   ;;  %v3271_v26 = vld [vmem:[%s4289_s4 + $0x40] sm:$0xff]   ;;  %v3281_v35 = vld [vmem:[%s4289_s4 + $0xd0] sm:$0xff]  }
  0x20   :  { %2859 = vmatpush3.bf16.msra.mxu0 %v3203_v30  ;;  %v3272_v27 = vld [vmem:[%s4289_s4] sm:$0xff]   ;;  %v3275_v30 = vld [vmem:[%s4289_s4 + $0x48] sm:$0xff]  }
  0x21   :  { %2887 = vmatpush3.bf16.msra.mxu1 %v3204_v31  ;;  %2900 = vmatprep.subr.bf16.mxu0 %v3211_v36  ;;  %v3273_v28 = vld [vmem:[%s4289_s4 + $0xc0] sm:$0xff]   ;;  %v3277_v31 = vld [vmem:[%s4289_s4 + $0xc8] sm:$0xff]  }
  0x22   :  { %2928 = vmatprep.subr.bf16.mxu1 %v3213_v38  ;;  %v3274_v29 = vld [vmem:[%s4289_s4 + $0x80] sm:$0xff]  }
  0x23   :  { %770 = vmatmul.mubr.bf16.vlgmr.msra.gmra.mrb[0].mxu0 %v3205_v32  ;;  %v3276_v32 = vld [vmem:[%s4289_s4 + $0x8] sm:$0xff]  }
  0x24   :  { %819 = vmatmul.mubr.bf16.vlgmr.msra.gmra.mrb[0].mxu1 %v3208_v34  ;;  %2901 = vmatpush3.bf16.msra.mxu0 %v3212_v37  ;;  %v3279_v34 = vld [vmem:[%s4289_s4 + $0x50] sm:$0xff]  }
  0x25   :  { %2929 = vmatpush3.bf16.msra.mxu1 %v3214_v39  ;;  %2902 = vmatprep.subr.bf16.mxu0 %v3215_v40 }
  0x26   :  { %2930 = vmatprep.subr.bf16.mxu1 %v3217_v42  ;;  %777 = vmatprep.mubr.bf16.mxu0 %v3232_v57 }
  0x27   :  { %826 = vmatprep.mubr.bf16.mxu1 %v3234_v58 }
  0x28   :  { %2903 = vmatpush3.bf16.msra.mxu0 %v3216_v41 }
  0x29   :  { %2931 = vmatpush3.bf16.msra.mxu1 %v3218_v43  ;;  %2904 = vmatprep.subr.bf16.mxu0 %v3219_v44 }
  0x2a   :  { %2932 = vmatprep.subr.bf16.mxu1 %v3221_v46 }
  0x2b   :  { %778 = vmatmul.mubr.bf16.gmra.mrb[4].mxu0 %v3237_v60 }
  0x2c   :  { %2905 = vmatpush3.bf16.msra.mxu0 %v3220_v45  ;;  %827 = vmatmul.mubr.bf16.gmra.mrb[4].mxu1 %v3238_v61 }
  0x2d   :  { %2933 = vmatpush3.bf16.msra.mxu1 %v3222_v47  ;;  %2906 = vmatprep.subr.bf16.mxu0 %v3223_v48 }
  0x2e   :  { %2934 = vmatprep.subr.bf16.mxu1 %v3225_v50  ;;  %867 = vmatprep.mubr.bf16.mxu0 %v3250_v8 }
  0x2f   :  { %916 = vmatprep.mubr.bf16.mxu1 %v3255_v12 }
  0x30   :  { %2907 = vmatpush3.bf16.msra.mxu0 %v3224_v49 }
  0x31   :  { %2935 = vmatpush3.bf16.msra.mxu1 %v3226_v51  ;;  %2908 = vmatprep.subr.bf16.mxu0 %v3227_v52 }
  0x32   :  { %2936 = vmatprep.subr.bf16.mxu1 %v3229_v54 }
  0x34   :  { %2909 = vmatpush3.bf16.msra.mxu0 %v3228_v53 }
  0x35   :  { %2937 = vmatpush3.bf16.msra.mxu1 %v3230_v55  ;;  %2910 = vmatprep.subr.bf16.mxu0 %v3231_v56 }
  0x36   :  { %2938 = vmatprep.subr.bf16.mxu1 %v3239_v62 }
  0x38   :  { %2911 = vmatpush3.bf16.msra.mxu0 %v3236_v59 }
  0x39   :  { %2939 = vmatpush3.bf16.msra.mxu1 %v3240_v63  ;;  %2912 = vmatprep.subr.bf16.mxu0 %v3241_v0 }
  0x3a   :  { %2940 = vmatprep.subr.bf16.mxu1 %v3243_v2 }
  0x3c   :  { %2913 = vmatpush3.bf16.msra.mxu0 %v3242_v1 }
  0x3d   :  { %2941 = vmatpush3.bf16.msra.mxu1 %v3244_v3  ;;  %2914 = vmatprep.subr.bf16.mxu0 %v3245_v4 }
  0x3e   :  { %2942 = vmatprep.subr.bf16.mxu1 %v3247_v6 }
  0x40   :  { %2915 = vmatpush3.bf16.msra.mxu0 %v3246_v5 }
  0x41   :  { %2943 = vmatpush3.bf16.msra.mxu1 %v3251_v9  ;;  %3129 = vmatprep.subr.bf16.mxu0 %v3252_v10 }
  0x42   :  { %2966 = vmatprep.subr.bf16.mxu1 %v3271_v26 }
  0x43   :  { %868 = vmatmul.mubr.bf16.vlgmr.msra.gmra.mrb[8].mxu0 %v3248_v7 }
  0x44   :  { %3130 = vmatpush3.bf16.msra.mxu0 %v3252_v10  ;;  %917 = vmatmul.mubr.bf16.vlgmr.msra.gmra.mrb[8].mxu1 %v3253_v11 }
  0x45   :  { %3131 = vmatprep.subr.bf16.mxu0 %v3256_v13  ;;  %875 = vmatprep.mubr.bf16.mxu0 %v3257_v14 }
  0x46   :  { %924 = vmatprep.mubr.bf16.mxu1 %v3261_v17  ;;  %2967 = vmatpush3.bf16.msra.mxu1 %v3272_v27 }
  0x47   :  { %2968 = vmatprep.subr.bf16.mxu1 %v3275_v30 }
  0x48   :  { %3132 = vmatpush3.bf16.msra.mxu0 %v3256_v13 }
  0x49   :  { %3133 = vmatprep.subr.bf16.mxu0 %v3260_v16 }
  0x4b   :  { %876 = vmatmul.mubr.bf16.gmra.mrb[12].mxu0 %v3259_v15 }
  0x4c   :  { %3134 = vmatpush3.bf16.msra.mxu0 %v3260_v16  ;;  %925 = vmatmul.mubr.bf16.gmra.mrb[12].mxu1 %v3263_v18 }
  0x4d   :  { %3135 = vmatprep.subr.bf16.mxu0 %v3264_v19  ;;  %3145 = vmatprep.mubr.bf16.mxu0 %v3269_v21 }
  0x50   :  { %3136 = vmatpush3.bf16.msra.mxu0 %v3264_v19 }
  0x51   :  { %3137 = vmatprep.subr.bf16.mxu0 %v3265_v20 }
  0x54   :  { %3138 = vmatpush3.bf16.msra.mxu0 %v3265_v20 }
  0x55   :  { %3139 = vmatprep.subr.bf16.mxu0 %v3266_v22 }
  0x58   :  { %3140 = vmatpush3.bf16.msra.mxu0 %v3266_v22 }
  0x59   :  { %3141 = vmatprep.subr.bf16.mxu0 %v3267_v23 }
  0x5c   :  { %3142 = vmatpush3.bf16.msra.mxu0 %v3267_v23 }
  0x5d   :  { %3143 = vmatprep.subr.bf16.mxu0 %v3268_v24 }
  0x60   :  { %3144 = vmatpush3.bf16.msra.mxu0 %v3268_v24 }
  0x61   :  { %2988 = vmatprep.subr.bf16.mxu0 %v3273_v28 }
  0x63   :  { %3146 = vmatmul.mubr.bf16.vlgmr.msra.gmra.mrb[16].mxu0 %v3270_v25 }
  0x64   :  { %2989 = vmatpush3.bf16.msra.mxu0 %v3274_v29 }
  0x65   :  { %2990 = vmatprep.subr.bf16.mxu0 %v3277_v31 }
  0x66   :  { %19 = vsyncpa [#allocation3], 0  ;;  %2969 = vmatpush3.bf16.msra.mxu1 %v3276_v32  ;;  %v3280_v36 = vld [vmem:[%s4289_s4 + $0x10] sm:$0xff]   ;;  %v3283_v38 = vld [vmem:[%s4289_s4 + $0x58] sm:$0xff]   ;;  %vm1045_vm0 = vcmask 1040384   ;;  %vm1065_vm1 = vcmask 1041408  }
  0x67   :  { %v3282_v37 = vld [vmem:[%s4289_s4 + $0x90] sm:$0xff]   ;;  %2970 = vmatprep.subr.bf16.mxu1 %v3279_v34  ;;  %v3284_v39 = vld [vmem:[%s4289_s4 + $0x18] sm:$0xff]   ;;  %v3287_v42 = vld [vmem:[%s4289_s4 + $0x60] sm:$0xff]   ;;  %vm1082_vm2 = vcmask 1042432   ;;  %vm3441_vm3 = vmmov 0  }
  0x68   :  { %2991 = vmatpush3.bf16.msra.mxu0 %v3278_v33  ;;  %v3285_v40 = vld [vmem:[%s4289_s4 + $0xd8] sm:$0xff]   ;;  %v3288_v43 = vld [vmem:[%s4289_s4 + $0x20] sm:$0xff]   ;;  %v3291_v46 = vld [vmem:[%s4289_s4 + $0x68] sm:$0xff]  }
  0x69   :  { %2992 = vmatprep.subr.bf16.mxu0 %v3281_v35  ;;  %v3286_v41 = vld [vmem:[%s4289_s4 + $0x98] sm:$0xff]   ;;  %v3289_v44 = vld [vmem:[%s4289_s4 + $0xe0] sm:$0xff]   ;;  %v3292_v47 = vld [vmem:[%s4289_s4 + $0x28] sm:$0xff]  }
  0x6a   :  { %2971 = vmatpush3.bf16.msra.mxu1 %v3280_v36  ;;  %v3290_v45 = vld [vmem:[%s4289_s4 + $0xa0] sm:$0xff]   ;;  %v3293_v48 = vld [vmem:[%s4289_s4 + $0xe8] sm:$0xff]   ;;  %v3295_v50 = vld [vmem:[%s4289_s4 + $0x70] sm:$0xff]  }
  0x6b   :  { %2972 = vmatprep.subr.bf16.mxu1 %v3283_v38  ;;  %v3294_v49 = vld [vmem:[%s4289_s4 + $0xa8] sm:$0xff]   ;;  %v3296_v51 = vld [vmem:[%s4289_s4 + $0x30] sm:$0xff]   ;;  %v3299_v54 = vld [vmem:[%s4289_s4 + $0x78] sm:$0xff]  }
  0x6c   :  { %2993 = vmatpush3.bf16.msra.mxu0 %v3282_v37  ;;  %v3297_v52 = vld [vmem:[%s4289_s4 + $0xf0] sm:$0xff]   ;;  %v3300_v55 = vld [vmem:[%s4289_s4 + $0x38] sm:$0xff]   ;;  %v3303_v58 = vld [vmem:[%s4289_s4 + $0x140] sm:$0xff]  }
  0x6d   :  { %2994 = vmatprep.subr.bf16.mxu0 %v3285_v40  ;;  %v3298_v53 = vld [vmem:[%s4289_s4 + $0xb0] sm:$0xff]   ;;  %v3301_v56 = vld [vmem:[%s4289_s4 + $0xf8] sm:$0xff]   ;;  %v3305_v59 = vld [vmem:[%s4289_s4 + $0x1c0] sm:$0xff]  }
  0x6e   :  { %2973 = vmatpush3.bf16.msra.mxu1 %v3284_v39  ;;  %v3302_v57 = vld [vmem:[%s4289_s4 + $0xb8] sm:$0xff]  }
  0x6f   :  { %2974 = vmatprep.subr.bf16.mxu1 %v3287_v42 }
  0x70   :  { %2995 = vmatpush3.bf16.msra.mxu0 %v3286_v41 }
  0x71   :  { %2996 = vmatprep.subr.bf16.mxu0 %v3289_v44 }
  0x72   :  { %2975 = vmatpush3.bf16.msra.mxu1 %v3288_v43 }
  0x73   :  { %2976 = vmatprep.subr.bf16.mxu1 %v3291_v46 }
  0x74   :  { %2997 = vmatpush3.bf16.msra.mxu0 %v3290_v45 }
  0x75   :  { %2998 = vmatprep.subr.bf16.mxu0 %v3293_v48 }
  0x76   :  { %2977 = vmatpush3.bf16.msra.mxu1 %v3292_v47 }
  0x77   :  { %2978 = vmatprep.subr.bf16.mxu1 %v3295_v50 }
  0x78   :  { %2999 = vmatpush3.bf16.msra.mxu0 %v3294_v49 }
  0x79   :  { %3000 = vmatprep.subr.bf16.mxu0 %v3297_v52 }
  0x7a   :  { %2979 = vmatpush3.bf16.msra.mxu1 %v3296_v51 }
  0x7b   :  { %2980 = vmatprep.subr.bf16.mxu1 %v3299_v54 }
  0x7c   :  { %3001 = vmatpush3.bf16.msra.mxu0 %v3298_v53 }
  0x7d   :  { %3002 = vmatprep.subr.bf16.mxu0 %v3301_v56 }
  0x7e   :  { %2981 = vmatpush3.bf16.msra.mxu1 %v3300_v55 }
  0x7f   :  { %3010 = vmatprep.subr.bf16.mxu1 %v3303_v58 }
  0x80   :  { %3003 = vmatpush3.bf16.msra.mxu0 %v3302_v57 }
  0x81   :  { %3032 = vmatprep.subr.bf16.mxu0 %v3305_v59  ;;  %v2698_v59 = vld [vmem:[%s4287_s2] ss:$0 sm:$0xff] }
  0xf6   :  { %v2860_v60 = vpop.f32.mrb[0].mxu0 }
  0xf7   :  { %v2888_v61 = vpop.f32.mrb[0].mxu1  ;;  %v2861_v62 = vpop.f32.mrb[1].mxu0 }
  0xf8   :  { %v2862_v63 = vadd.f32 %v2861_v62, %v2860_v60  ;;  %v2889_v0 = vpop.f32.mrb[1].mxu1  ;;  %v2863_v1 = vpop.f32.mrb[2].mxu0 }
  0xf9   :  { %v2890_v2 = vadd.f32 %v2889_v0, %v2888_v61  ;;  %v2891_v3 = vpop.f32.mrb[2].mxu1  ;;  %v2864_v4 = vpop.f32.mrb[3].mxu0 }
  0xfa   :  { %v2865_v5 = vadd.f32 %v2864_v4, %v2863_v1  ;;  %v2892_v6 = vpop.f32.mrb[3].mxu1 }
  0xfb   :  { %v821_v7 = vadd.f32 %v2890_v2, %v2862_v63  ;;  %v2893_v8 = vadd.f32 %v2892_v6, %v2891_v3 }
  0xfd   :  { %v824_v9 = vadd.f32 %v2893_v8, %v2865_v5  ;;  %v2699_v5 = vld [vmem:[%s4288_s3] ss:$0 sm:$0xff]  ;;  %v3439_v8 = vmov 0  }
  0xfe   :  { %v2866_v10 = vpop.f32.mrb[4].mxu0 }
  0xff   :  { %v2894_v11 = vpop.f32.mrb[4].mxu1  ;;  %v2867_v12 = vpop.f32.mrb[5].mxu0 }
 0x100   :  { %v2895_v13 = vpop.f32.mrb[5].mxu1  ;;  %v2868_v14 = vadd.f32 %v2867_v12, %v2866_v10  ;;  %v2869_v16 = vpop.f32.mrb[6].mxu0 }
 0x101   :  { %v2896_v15 = vadd.f32 %v2895_v13, %v2894_v11  ;;  %v2897_v17 = vpop.f32.mrb[6].mxu1  ;;  %v2870_v18 = vpop.f32.mrb[7].mxu0 }
 0x102   :  { %v2898_v19 = vpop.f32.mrb[7].mxu1  ;;  %v2871_v21 = vadd.f32 %v2870_v18, %v2869_v16 }
 0x103   :  { %v829_v20 = vadd.f32 %v2896_v15, %v2868_v14  ;;  %v2899_v22 = vadd.f32 %v2898_v19, %v2897_v17  ;;  %v3898_v14 = vrot.slane %v3439_v8, 6 }
 0x105   :  { %v832_v23 = vadd.f32 %v2899_v22, %v2871_v21 }
 0x116   :  { %v2916_v24 = vpop.f32.mrb[8].mxu0 }
 0x117   :  { %v2917_v25 = vpop.f32.mrb[9].mxu0  ;;  %v2944_v28 = vpop.f32.mrb[8].mxu1 }
 0x118   :  { %v2918_v26 = vadd.f32 %v2917_v25, %v2916_v24  ;;  %v2919_v27 = vpop.f32.mrb[10].mxu0  ;;  %v2945_v32 = vpop.f32.mrb[9].mxu1 }
 0x119   :  { %v2920_v29 = vpop.f32.mrb[11].mxu0  ;;  %v2946_v33 = vadd.f32 %v2945_v32, %v2944_v28  ;;  %v2947_v34 = vpop.f32.mrb[10].mxu1 }
 0x11a   :  { %v870_v30 = vadd.f32 %v2918_v26, %v821_v7  ;;  %v2921_v31 = vadd.f32 %v2920_v29, %v2919_v27  ;;  %v2948_v36 = vpop.f32.mrb[11].mxu1 }
 0x11b   :  { %v2949_v37 = vadd.f32 %v2948_v36, %v2947_v34 }
 0x11c   :  { %v873_v35 = vadd.f32 %v2921_v31, %v824_v9  ;;  %v919_v38 = vadd.f32 %v2946_v33, %v870_v30  ;;  %v1025_v9 = vrot.slane %v3439_v8, 7 }
 0x11e   :  { %v2922_v39 = vpop.f32.mrb[12].mxu0  ;;  %v922_v41 = vadd.f32 %v2949_v37, %v873_v35  ;;  %v1048_v17 = vsel %vm1045_vm0, 0, %v1025_v9 }
 0x11f   :  { %v2923_v40 = vpop.f32.mrb[13].mxu0  ;;  %v2950_v44 = vpop.f32.mrb[12].mxu1 }
 0x120   :  { %v2924_v42 = vadd.f32 %v2923_v40, %v2922_v39  ;;  %v2925_v43 = vpop.f32.mrb[14].mxu0  ;;  %v2951_v48 = vpop.f32.mrb[13].mxu1 }
 0x121   :  { %v2926_v45 = vpop.f32.mrb[15].mxu0  ;;  %v2952_v49 = vadd.f32 %v2951_v48, %v2950_v44  ;;  %v2953_v50 = vpop.f32.mrb[14].mxu1 }
 0x122   :  { %v878_v46 = vadd.f32 %v2924_v42, %v829_v20  ;;  %v2927_v47 = vadd.f32 %v2926_v45, %v2925_v43  ;;  %v2954_v52 = vpop.f32.mrb[15].mxu1  ;;  %v1067_v20 = vsel %vm1065_vm1, %v1048_v17, %v3898_v14  ;;  %v3304_v42 = vld [vmem:[%s4289_s4 + $0x100] sm:$0xff]  }
 0x123   :  { %v2955_v53 = vadd.f32 %v2954_v52, %v2953_v50 }
 0x124   :  { %v881_v51 = vadd.f32 %v2927_v47, %v832_v23  ;;  %v927_v54 = vadd.f32 %v2952_v49, %v878_v46  ;;  %v3306_v49 = vld [vmem:[%s4289_s4 + $0x180] sm:$0xff]  }
 0x126   :  { %v930_v55 = vadd.f32 %v2955_v53, %v881_v51 }
 0x136   :  { %v3147_v56 = vpop.f32.mrb[16].mxu0 }
 0x137   :  { %v976_v57 = vadd.f32 %v3147_v56, %v927_v54  ;;  %v967_v58 = vpop.f32.mrb[17].mxu0  ;;  %v3307_v54 = vld [vmem:[%s4289_s4 + $0x148] sm:$0xff]  }
 0x138   :  { %v968_v60 = vadd.f32 %v967_v58, %v919_v38  ;;  %v3148_v61 = vpop.f32.mrb[18].mxu0 }
 0x139   :  { %v984_v62 = vmax.f32 %v976_v57, 0.0  ;;  %v979_v63 = vadd.f32 %v3148_v61, %v930_v55  ;;  %v970_v0 = vpop.f32.mrb[19].mxu0  ;;  %v3309_v57 = vld [vmem:[%s4289_s4 + $0x1c8] sm:$0xff]  }
 0x13a   :  { %v982_v1 = vmax.f32 %v968_v60, 0.0  ;;  %v971_v2 = vadd.f32 %v970_v0, %v922_v41  ;;  %v3308_v61 = vld [vmem:[%s4289_s4 + $0x108] sm:$0xff]  }
 0x13b   :  { %v995_v3 = vmul.f32 %v2698_v59, %v984_v62  ;;  %v985_v4 = vmax.f32 %v979_v63, 0.0 }
 0x13c   :  { %v993_v6 = vmul.f32 %v2698_v59, %v982_v1  ;;  %v983_v7 = vmax.f32 %v971_v2, 0.0  ;;  %v3310_v1 = vld [vmem:[%s4289_s4 + $0x188] sm:$0xff]   ;;  %v3311_v2 = vld [vmem:[%s4289_s4 + $0x150] sm:$0xff]  }
 0x13d   :  { %v996_v10 = vmul.f32 %v2698_v59, %v985_v4  ;;  %v1006_v12 = vadd.f32 %v2699_v5, %v995_v3 }
 0x13e   :  { %v994_v11 = vmul.f32 %v2698_v59, %v983_v7  ;;  %v1004_v15 = vadd.f32 %v2699_v5, %v993_v6  ;;  %v3313_v6 = vld [vmem:[%s4289_s4 + $0x1d0] sm:$0xff]  }
 0x13f   :  { %v1007_v13 = vadd.f32 %v2699_v5, %v996_v10 }
 0x140   :  { %v1005_v16 = vadd.f32 %v2699_v5, %v994_v11 }
 0x141   :  { %v3901_v18 = vpack.c.bf16 %v1007_v13, %v1006_v12 }
 0x142   :  { %v3903_v19 = vpack.c.bf16 %v1005_v16, %v1004_v15  ;;  %v3312_v15 = vld [vmem:[%s4289_s4 + $0x110] sm:$0xff]  }
 0x143   :  { %v1020_v21 = vrot.slane %v3901_v18, 4  ;;  %v1019_v22 = vrot.slane %v3901_v18, 1  ;;  %v1022_v23 = vrot.slane %v3901_v18, 6  ;;  %v1021_v31 = vrot.slane %v3901_v18, 5 }
 0x144   :  { %v1011_v24 = vrot.slane %v3903_v19, 1  ;;  %v1012_v25 = vrot.slane %v3903_v19, 4  ;;  %v1014_v26 = vrot.slane %v3903_v19, 2  ;;  %v1013_v27 = vrot.slane %v3903_v19, 5 }
 0x145   :  { %v2700_v28 = vrot.slane %v3903_v19, 10  ;;  %v1035_v29 = vrot.slane %v1019_v22, 6  ;;  %v1042_v30 = vrot.slane %v1022_v23, 2  ;;  %v1040_v35 = vrot.slane %v1020_v21, 2 }
 0x146   :  { %v1033_v32 = vrot.slane %v1012_v25, 6  ;;  %v1038_v33 = vrot.slane %v1011_v24, 2  ;;  %v1026_v34 = vrot.slane %v1011_v24, 7  ;;  %v1034_v36 = vrot.slane %v1013_v27, 6 }
 0x147   :  { %v1039_v37 = vrot.slane %v1014_v26, 2  ;;  %v1056_v38 = vsel %vm1045_vm0, %v1011_v24, %v2700_v28  ;;  %v2701_v39 = vrot.slane %v3903_v19, 13  ;;  %v1036_v44 = vrot.slane %v1020_v21, 6  ;;  %v3318_v21 = vld [vmem:[%s4289_s4 + $0x198] sm:$0xff]   ;;  %v3320_v24 = vld [vmem:[%s4289_s4 + $0x120] sm:$0xff]   ;;  %v3324_v28 = vld [vmem:[%s4289_s4 + $0x128] sm:$0xff]  }
 0x148   :  { %v1069_v40 = vsel %vm1065_vm1, %v1048_v17, %v1033_v32  ;;  %v1050_v41 = vsel %vm1045_vm0, 0, %v1026_v34  ;;  %v1076_v43 = vsel %vm1065_vm1, %v1056_v38, %v1035_v29  ;;  %v1071_v47 = vsel %vm1065_vm1, %v1048_v17, %v1034_v36  ;;  %v3326_v29 = vld [vmem:[%s4289_s4 + $0x1a8] sm:$0xff]   ;;  %v3328_v32 = vld [vmem:[%s4289_s4 + $0x130] sm:$0xff]   ;;  %v3331_v34 = vld [vmem:[%s4289_s4 + $0x178] sm:$0xff]  }
 0x149   :  { %v1087_v45 = vsel %vm1082_vm2, %v1069_v40, %v1038_v33  ;;  %v1072_v46 = vsel %vm1065_vm1, %v1050_v41, %v3898_v14  ;;  %v1099_v48 = vsel %vm1082_vm2, %v1076_v43, %v1042_v30  ;;  %v1084_v50 = vsel %vm1082_vm2, %v1067_v20, %v1014_v26  ;;  %v3316_v20 = vld [vmem:[%s4289_s4 + $0x118] sm:$0xff]   ;;  %v3327_v30 = vld [vmem:[%s4289_s4 + $0x170] sm:$0xff]   ;;  %v3335_v38 = vld [vmem:[%s4289_s4 + $0x200] sm:$0xff]  }
 0x14a   :  { %1718 = vmatprep.mubr.bf16.mxu1 %v1087_v45  ;;  %v1093_v51 = vsel %vm1082_vm2, %v1072_v46, %v1040_v35  ;;  %v1043_v52 = vrot.slane %v1019_v22, 2  ;;  %v1061_v53 = vsel %vm1045_vm0, %v1012_v25, %v2701_v39  ;;  %v1090_v55 = vsel %vm1082_vm2, %v1071_v47, %v1039_v37  ;;  %v3319_v22 = vld [vmem:[%s4289_s4 + $0x160] sm:$0xff]   ;;  %v3330_v33 = vld [vmem:[%s4289_s4 + $0x1b0] sm:$0xff]   ;;  %v3333_v35 = vld [vmem:[%s4289_s4 + $0x1f8] sm:$0xff]  }
 0x14b   :  { %1719 = vmatmul.mubr.bf16.vlgmr.msra.gmra.mrb[16].mxu1 %v1084_v50  ;;  %1758 = vmatprep.mubr.bf16.mxu0 %v1093_v51  ;;  %v1079_v56 = vsel %vm1065_vm1, %v1061_v53, %v1036_v44  ;;  %v1027_v58 = vrot.slane %v1014_v26, 7  ;;  %v1023_v59 = vrot.slane %v3901_v18, 2  ;;  %v1029_v62 = vrot.slane %v1013_v27, 7  ;;  %v3314_v18 = vld [vmem:[%s4289_s4 + $0x190] sm:$0xff]   ;;  %v3322_v25 = vld [vmem:[%s4289_s4 + $0x1a0] sm:$0xff]   ;;  %v3323_v26 = vld [vmem:[%s4289_s4 + $0x168] sm:$0xff]  }
 0x14c   :  { %3011 = vmatpush3.bf16.msra.mxu1 %v3304_v42  ;;  %1759 = vmatmul.mubr.bf16.vlgmr.msra.gmra.mrb[20].mxu0 %v1090_v55  ;;  %v1105_v60 = vsel %vm1082_vm2, %v1079_v56, %v1043_v52  ;;  %v2702_v63 = vrot.slane %v3903_v19, 14  ;;  %v1037_v0 = vrot.slane %v1021_v31, 6  ;;  %v1041_v3 = vrot.slane %v1021_v31, 2  ;;  %v3329_v31 = vld [vmem:[%s4289_s4 + $0x1f0] sm:$0xff]   ;;  %v3332_v36 = vld [vmem:[%s4289_s4 + $0x138] sm:$0xff]   ;;  %v3336_v40 = vld [vmem:[%s4289_s4 + $0x208] sm:$0xff]  }
 0x14d   :  { %1798 = vmatprep.mubr.bf16.mxu1 %v1099_v48  ;;  %3033 = vmatpush3.bf16.msra.mxu0 %v3306_v49  ;;  %v1053_v4 = vsel %vm1045_vm0, %v3903_v19, %v1027_v58  ;;  %v1044_v5 = vrot.slane %v1023_v59, 2  ;;  %v1058_v9 = vsel %vm1045_vm0, 0, %v1029_v62  ;;  %v3317_v19 = vld [vmem:[%s4289_s4 + $0x1d8] sm:$0xff]   ;;  %v3440_v39 = vmov 0.0   ;;  %v3337_v41 = vld [vmem:[%s4289_s4 + $0x210] sm:$0xff]   ;;  %v3339_v43 = vld [vmem:[%s4289_s4 + $0x220] sm:$0xff]  }
 0x14e   :  { %1838 = vmatprep.mubr.bf16.mxu0 %v1105_v60  ;;  %3012 = vmatprep.subr.bf16.mxu1 %v3307_v54  ;;  %v1074_v7 = vsel %vm1065_vm1, %v1053_v4, %v1022_v23  ;;  %v1064_v10 = vsel %vm1045_vm0, %v1013_v27, %v2702_v63  ;;  %v1077_v12 = vsel %vm1065_vm1, %v1058_v9, %v3898_v14  ;;  %v3315_v14 = vld [vmem:[%s4289_s4 + $0x158] sm:$0xff]   ;;  %v3321_v23 = vld [vmem:[%s4289_s4 + $0x1e0] sm:$0xff]   ;;  %v3325_v27 = vld [vmem:[%s4289_s4 + $0x1e8] sm:$0xff]  }
 0x14f   :  { %3034 = vmatprep.subr.bf16.mxu0 %v3309_v57  ;;  %v1096_v11 = vsel %vm1082_vm2, %v1074_v7, %v1041_v3  ;;  %v1081_v13 = vsel %vm1065_vm1, %v1064_v10, %v1037_v0  ;;  %v1102_v16 = vsel %vm1082_vm2, %v1077_v12, %v1023_v59  ;;  %v3334_v37 = vld [vmem:[%s4289_s4 + $0x1b8] sm:$0xff]   ;;  %v3340_v44 = vld [vmem:[%s4289_s4 + $0x228] sm:$0xff]   ;;  %v3341_v45 = vld [vmem:[%s4289_s4 + $0x230] sm:$0xff]  }
 0x150   :  { %3013 = vmatpush3.bf16.msra.mxu1 %v3308_v61  ;;  %v3972_v17 = vsel %vm1082_vm2, %v1081_v13, %v1044_v5  ;;  %v3338_v42 = vld [vmem:[%s4289_s4 + $0x218] sm:$0xff]   ;;  %v3343_v47 = vld [vmem:[%s4292_s7 + $0x40] sm:$0xff]   ;;  %v3347_v51 = vld [vmem:[%s4292_s7 + $0x48] sm:$0xff]  }
 0x151   :  { %3035 = vmatpush3.bf16.msra.mxu0 %v3310_v1  ;;  %3014 = vmatprep.subr.bf16.mxu1 %v3311_v2  ;;  %v3342_v46 = vld [vmem:[%s4289_s4 + $0x238] sm:$0xff]   ;;  %v3344_v48 = vld [vmem:[%s4292_s7 + $0xc0] sm:$0xff]   ;;  %v3348_v52 = vld [vmem:[%s4292_s7 + $0xc8] sm:$0xff]  }
 0x152   :  { %3036 = vmatprep.subr.bf16.mxu0 %v3313_v6  ;;  %v3345_v49 = vld [vmem:[%s4292_s7] sm:$0xff]   ;;  %v3349_v53 = vld [vmem:[%s4292_s7 + $0x8] sm:$0xff]   ;;  %v3351_v55 = vld [vmem:[%s4292_s7 + $0x50] sm:$0xff]  }
 0x153   :  { %v3346_v50 = vld [vmem:[%s4292_s7 + $0x80] sm:$0xff]   ;;  %v3350_v54 = vld [vmem:[%s4292_s7 + $0x88] sm:$0xff]   ;;  %v3352_v56 = vld [vmem:[%s4292_s7 + $0xd0] sm:$0xff]  }
 0x154   :  { %3015 = vmatpush3.bf16.msra.mxu1 %v3312_v15  ;;  %v3353_v57 = vld [vmem:[%s4292_s7 + $0x10] sm:$0xff]   ;;  %v3355_v59 = vld [vmem:[%s4292_s7 + $0x58] sm:$0xff]   ;;  %v3359_v63 = vld [vmem:[%s4292_s7 + $0x60] sm:$0xff]  }
 0x155   :  { %3037 = vmatpush3.bf16.msra.mxu0 %v3314_v18  ;;  %3016 = vmatprep.subr.bf16.mxu1 %v3315_v14  ;;  %v3354_v58 = vld [vmem:[%s4292_s7 + $0x90] sm:$0xff]   ;;  %v3356_v60 = vld [vmem:[%s4292_s7 + $0xd8] sm:$0xff]   ;;  %v3360_v0 = vld [vmem:[%s4292_s7 + $0xe0] sm:$0xff]  }
 0x156   :  { %3038 = vmatprep.subr.bf16.mxu0 %v3317_v19  ;;  %v3357_v61 = vld [vmem:[%s4292_s7 + $0x18] sm:$0xff]   ;;  %v3361_v1 = vld [vmem:[%s4292_s7 + $0x20] sm:$0xff]   ;;  %v3363_v3 = vld [vmem:[%s4292_s7 + $0x68] sm:$0xff]  }
 0x157   :  { %v3358_v62 = vld [vmem:[%s4292_s7 + $0x98] sm:$0xff]   ;;  %v3362_v2 = vld [vmem:[%s4292_s7 + $0xa0] sm:$0xff]   ;;  %v3364_v4 = vld [vmem:[%s4292_s7 + $0xe8] sm:$0xff]  }
 0x158   :  { %3017 = vmatpush3.bf16.msra.mxu1 %v3316_v20  ;;  %v3365_v5 = vld [vmem:[%s4292_s7 + $0x28] sm:$0xff]   ;;  %v3367_v7 = vld [vmem:[%s4292_s7 + $0x70] sm:$0xff]   ;;  %v3371_v12 = vld [vmem:[%s4292_s7 + $0x78] sm:$0xff]  }
 0x159   :  { %3039 = vmatpush3.bf16.msra.mxu0 %v3318_v21  ;;  %3018 = vmatprep.subr.bf16.mxu1 %v3319_v22  ;;  %v3366_v6 = vld [vmem:[%s4292_s7 + $0xa8] sm:$0xff]   ;;  %v3368_v9 = vld [vmem:[%s4292_s7 + $0xf0] sm:$0xff]   ;;  %v3372_v13 = vld [vmem:[%s4292_s7 + $0xf8] sm:$0xff]  }
 0x15a   :  { %3040 = vmatprep.subr.bf16.mxu0 %v3321_v23  ;;  %v3369_v10 = vld [vmem:[%s4292_s7 + $0x30] sm:$0xff]   ;;  %v3373_v15 = vld [vmem:[%s4292_s7 + $0x38] sm:$0xff]  }
 0x15c   :  { %3019 = vmatpush3.bf16.msra.mxu1 %v3320_v24 }
 0x15d   :  { %3041 = vmatpush3.bf16.msra.mxu0 %v3322_v25  ;;  %3020 = vmatprep.subr.bf16.mxu1 %v3323_v26 }
 0x15e   :  { %3042 = vmatprep.subr.bf16.mxu0 %v3325_v27 }
 0x160   :  { %3021 = vmatpush3.bf16.msra.mxu1 %v3324_v28 }
 0x161   :  { %3043 = vmatpush3.bf16.msra.mxu0 %v3326_v29  ;;  %3022 = vmatprep.subr.bf16.mxu1 %v3327_v30 }
 0x162   :  { %3044 = vmatprep.subr.bf16.mxu0 %v3329_v31 }
 0x164   :  { %3023 = vmatpush3.bf16.msra.mxu1 %v3328_v32 }
 0x165   :  { %3045 = vmatpush3.bf16.msra.mxu0 %v3330_v33  ;;  %3024 = vmatprep.subr.bf16.mxu1 %v3331_v34 }
 0x166   :  { %3046 = vmatprep.subr.bf16.mxu0 %v3333_v35 }
 0x168   :  { %3025 = vmatpush3.bf16.msra.mxu1 %v3332_v36 }
 0x169   :  { %3047 = vmatpush3.bf16.msra.mxu0 %v3334_v37  ;;  %3149 = vmatprep.subr.bf16.mxu1 %v3440_v39 }
 0x16a   :  { %3063 = vmatprep.subr.bf16.mxu0 %v3343_v47  ;;  %v2776_v47 = vld [vmem:[%s4291_s6] ss:$0 sm:$0xff] }
 0x16b   :  { %1799 = vmatmul.mubr.bf16.vlgmr.msra.gmra.mrb[20].mxu1 %v1096_v11  ;;  %v3370_v11 = vld [vmem:[%s4292_s7 + $0xb0] sm:$0xff]  }
 0x16c   :  { %1839 = vmatmul.mubr.bf16.vlgmr.msra.gmra.mrb[24].mxu0 %v1102_v16  ;;  %3150 = vmatpush3.bf16.msra.mxu1 %v3335_v38  ;;  %v3374_v16 = vld [vmem:[%s4292_s7 + $0xb8] sm:$0xff]  }
 0x16d   :  { %3151 = vmatprep.subr.bf16.mxu1 %v3440_v39  ;;  %3165 = vmatprep.mubr.msk.bf16.mxu1 %vm3441_vm3, %v3440_v39 }
 0x16e   :  { %3064 = vmatpush3.bf16.msra.mxu0 %v3345_v49 }
 0x16f   :  { %3065 = vmatprep.subr.bf16.mxu0 %v3347_v51 }
 0x170   :  { %3152 = vmatpush3.bf16.msra.mxu1 %v3336_v40 }
 0x171   :  { %3153 = vmatprep.subr.bf16.mxu1 %v3440_v39 }
 0x172   :  { %3066 = vmatpush3.bf16.msra.mxu0 %v3349_v53 }
 0x173   :  { %3067 = vmatprep.subr.bf16.mxu0 %v3351_v55  ;;  %v3380_v55 = vld [vmem:[%s4295_s10 + $0x14] ss:$8 sps:$4 sm:$0xff]  }
 0x174   :  { %3154 = vmatpush3.bf16.msra.mxu1 %v3337_v41 }
 0x175   :  { %3155 = vmatprep.subr.bf16.mxu1 %v3440_v39 }
 0x176   :  { %3068 = vmatpush3.bf16.msra.mxu0 %v3353_v57  ;;  %v3383_v57 = vld [vmem:[%s4295_s10 + $0x24] ss:$8 sps:$4 sm:$0xff]  }
 0x177   :  { %3069 = vmatprep.subr.bf16.mxu0 %v3355_v59  ;;  %v3386_v59 = vld [vmem:[%s4295_s10 + $0x34] ss:$8 sps:$4 sm:$0xff]  }
 0x178   :  { %3156 = vmatpush3.bf16.msra.mxu1 %v3338_v42 }
 0x179   :  { %3157 = vmatprep.subr.bf16.mxu1 %v3440_v39 }
 0x17a   :  { %3070 = vmatpush3.bf16.msra.mxu0 %v3357_v61  ;;  %v3387_v61 = vld [vmem:[%s4295_s10 + $0x40] ss:$8 sps:$4 sm:$0xff]  }
 0x17b   :  { %3071 = vmatprep.subr.bf16.mxu0 %v3359_v63  ;;  %v3390_v63 = vld [vmem:[%s4295_s10 + $0x50] ss:$8 sps:$4 sm:$0xff]  }
 0x17c   :  { %3158 = vmatpush3.bf16.msra.mxu1 %v3339_v43  ;;  %v2775_v43 = vld [vmem:[%s4290_s5] ss:$0 sm:$0xff] }
 0x17d   :  { %3159 = vmatprep.subr.bf16.mxu1 %v3440_v39 }
 0x17e   :  { %3072 = vmatpush3.bf16.msra.mxu0 %v3361_v1  ;;  %v3395_v1 = vld [vmem:[%s4295_s10 + $0x64] ss:$8 sps:$4 sm:$0xff]  }
 0x17f   :  { %3073 = vmatprep.subr.bf16.mxu0 %v3363_v3  ;;  %v3396_v3 = vld [vmem:[%s4295_s10 + $0x70] ss:$8 sps:$4 sm:$0xff]  }
 0x180   :  { %3160 = vmatpush3.bf16.msra.mxu1 %v3340_v44 }
 0x181   :  { %3161 = vmatprep.subr.bf16.mxu1 %v3440_v39 }
 0x182   :  { %3074 = vmatpush3.bf16.msra.mxu0 %v3365_v5  ;;  %v3400_v5 = vld [vmem:[%s4297_s12] sm:$0xff]  }
 0x183   :  { %3075 = vmatprep.subr.bf16.mxu0 %v3367_v7  ;;  %v3402_v7 = vld [vmem:[%s4297_s12 + $0x8] sm:$0xff]  }
 0x184   :  { %3162 = vmatpush3.bf16.msra.mxu1 %v3341_v45 }
 0x185   :  { %3163 = vmatprep.subr.bf16.mxu1 %v3440_v39 }
 0x186   :  { %3076 = vmatpush3.bf16.msra.mxu0 %v3369_v10  ;;  %v3404_v10 = vld [vmem:[%s4297_s12 + $0x10] sm:$0xff]  }
 0x187   :  { %3077 = vmatprep.subr.bf16.mxu0 %v3371_v12  ;;  %v3406_v12 = vld [vmem:[%s4297_s12 + $0x18] sm:$0xff]  }
 0x188   :  { %3164 = vmatpush3.bf16.msra.mxu1 %v3342_v46 }
 0x189   :  { %3085 = vmatprep.subr.bf16.mxu1 %v3344_v48 }
 0x18a   :  { %3078 = vmatpush3.bf16.msra.mxu0 %v3373_v15  ;;  %v3408_v15 = vld [vmem:[%s4297_s12 + $0x20] sm:$0xff]  }
 0x18b   :  { %3166 = vmatmul.mubr.bf16.vlgmr.msra.gmra.mrb[24].mxu1 %v3972_v17  ;;  %v3377_v17 = vld [vmem:[%s4295_s10 + $0x4] ss:$8 sps:$4 sm:$0xff]  }
 0x18c   :  { %3086 = vmatpush3.bf16.msra.mxu1 %v3346_v50  ;;  %2373 = vmatprep.subr.bf16.mxu0 %v3377_v17  ;;  %v3410_v17 = vld [vmem:[%s4297_s12 + $0x28] sm:$0xff]  }
 0x18d   :  { %3087 = vmatprep.subr.bf16.mxu1 %v3348_v52 }
 0x190   :  { %3088 = vmatpush3.bf16.msra.mxu1 %v3350_v54  ;;  %v3375_v54 = vld [vmem:[%s4295_s10] ss:$8 sps:$4 sm:$0xff]  }
 0x191   :  { %3089 = vmatprep.subr.bf16.mxu1 %v3352_v56  ;;  %v3378_v56 = vld [vmem:[%s4295_s10 + $0x10] ss:$8 sps:$4 sm:$0xff]  }
 0x194   :  { %3090 = vmatpush3.bf16.msra.mxu1 %v3354_v58  ;;  %v3381_v58 = vld [vmem:[%s4295_s10 + $0x20] ss:$8 sps:$4 sm:$0xff]  }
 0x195   :  { %3091 = vmatprep.subr.bf16.mxu1 %v3356_v60  ;;  %v3389_v60 = vld [vmem:[%s4295_s10 + $0x44] ss:$8 sps:$4 sm:$0xff]  }
 0x198   :  { %3092 = vmatpush3.bf16.msra.mxu1 %v3358_v62  ;;  %v3392_v62 = vld [vmem:[%s4295_s10 + $0x54] ss:$8 sps:$4 sm:$0xff]  }
 0x199   :  { %3093 = vmatprep.subr.bf16.mxu1 %v3360_v0  ;;  %v3393_v0 = vld [vmem:[%s4295_s10 + $0x60] ss:$8 sps:$4 sm:$0xff]  }
 0x19c   :  { %3094 = vmatpush3.bf16.msra.mxu1 %v3362_v2  ;;  %v3398_v2 = vld [vmem:[%s4295_s10 + $0x74] ss:$8 sps:$4 sm:$0xff]  }
 0x19d   :  { %3095 = vmatprep.subr.bf16.mxu1 %v3364_v4  ;;  %v3399_v4 = vld [vmem:[%s4297_s12 + $0x40] sm:$0xff]  }
 0x1a0   :  { %3096 = vmatpush3.bf16.msra.mxu1 %v3366_v6  ;;  %v3401_v6 = vld [vmem:[%s4297_s12 + $0x48] sm:$0xff]  }
 0x1a1   :  { %3097 = vmatprep.subr.bf16.mxu1 %v3368_v9  ;;  %v3403_v9 = vld [vmem:[%s4297_s12 + $0x50] sm:$0xff]  }
 0x1a4   :  { %3098 = vmatpush3.bf16.msra.mxu1 %v3370_v11  ;;  %v3405_v11 = vld [vmem:[%s4297_s12 + $0x58] sm:$0xff]  }
 0x1a5   :  { %3099 = vmatprep.subr.bf16.mxu1 %v3372_v13  ;;  %v3407_v13 = vld [vmem:[%s4297_s12 + $0x60] sm:$0xff]  }
 0x1a8   :  { %3100 = vmatpush3.bf16.msra.mxu1 %v3374_v16  ;;  %v3409_v16 = vld [vmem:[%s4297_s12 + $0x68] sm:$0xff]  }
 0x1a9   :  { %3107 = vmatprep.subr.bf16.mxu1 %v3399_v4 }
 0x21e   :  { %v2982_v18 = vpop.f32.mrb[16].mxu1 }
 0x21f   :  { %v2983_v14 = vpop.f32.mrb[17].mxu1  ;;  %v3004_v19 = vpop.f32.mrb[20].mxu0 }
 0x220   :  { %v2984_v20 = vadd.f32 %v2983_v14, %v2982_v18  ;;  %v2985_v21 = vpop.f32.mrb[18].mxu1  ;;  %v3005_v22 = vpop.f32.mrb[21].mxu0 }
 0x221   :  { %v3006_v23 = vadd.f32 %v3005_v22, %v3004_v19  ;;  %v2986_v24 = vpop.f32.mrb[19].mxu1  ;;  %v3007_v25 = vpop.f32.mrb[22].mxu0 }
 0x222   :  { %v3008_v26 = vpop.f32.mrb[23].mxu0 }
 0x223   :  { %v1761_v27 = vadd.f32 %v3006_v23, %v2984_v20 }
 0x23e   :  { %v3026_v28 = vpop.f32.mrb[20].mxu1 }
 0x23f   :  { %v3027_v29 = vpop.f32.mrb[21].mxu1  ;;  %v3048_v30 = vpop.f32.mrb[24].mxu0 }
 0x240   :  { %v3028_v31 = vadd.f32 %v3027_v29, %v3026_v28  ;;  %v3029_v32 = vpop.f32.mrb[22].mxu1  ;;  %v3049_v33 = vpop.f32.mrb[25].mxu0  ;;  %v2809_v28 = vld [vmem:[%s4293_s8] ss:$0 sm:$0xff] }
 0x241   :  { %v3050_v34 = vadd.f32 %v3049_v33, %v3048_v30  ;;  %v3030_v35 = vpop.f32.mrb[23].mxu1  ;;  %v3051_v36 = vpop.f32.mrb[26].mxu0  ;;  %v2810_v30 = vld [vmem:[%s4294_s9] ss:$0 sm:$0xff] }
 0x242   :  { %v1801_v37 = vadd.f32 %v3028_v31, %v1761_v27  ;;  %v3052_v38 = vpop.f32.mrb[27].mxu0  ;;  %v3412_v35 = vld [vmem:[%s4297_s12 + $0x30] sm:$0xff]   ;;  %v3413_v36 = vld [vmem:[%s4297_s12 + $0x78] sm:$0xff]  }
 0x243   :  { %v2283_v38 = vlaneseq }
 0x244   :  { %v1841_v39 = vadd.f32 %v3050_v34, %v1801_v37  ;;  %v3411_v34 = vld [vmem:[%s4297_s12 + $0x70] sm:$0xff]   ;;  %v3414_v37 = vld [vmem:[%s4297_s12 + $0x38] sm:$0xff]  }
 0x25e   :  { %v1880_v40 = vpop.f32.mrb[24].mxu1 }
 0x25f   :  { %v1881_v41 = vadd.f32 %v1880_v40, %v1841_v39  ;;  %v3167_v42 = vpop.f32.mrb[25].mxu1  ;;  %v2284_v39 = vshrl.u32 %v2283_v38, 7 }
 0x260   :  { %v1883_v44 = vpop.f32.mrb[26].mxu1 }
 0x261   :  { %v1886_v45 = vmax.f32 %v1881_v41, 0.0  ;;  %v3168_v46 = vpop.f32.mrb[27].mxu1  ;;  %v2285_v40 = vsub.s32 0, %v2284_v39  ;;  %v2281_v41 = vld [vmem:[%s4296_s11] sm:$0x3]  ;;  %v2289_v42 = vsub.s32 1, %v2284_v39 }
 0x262   :  { %s3442_s11 = smov [#allocation2]  }
 0x263   :  { %v1894_v48 = vmul.f32 %v2775_v43, %v1886_v45  ;;  %v2286_v43 = vrot.slane %v2281_v41, %v2285_v40  ;;  %v2290_v44 = vrot.slane %v2281_v41, %v2289_v42  ;;  %s2600_s29 = sshll.u32 %s3442_s11, 4  ;;  %s2601_s29 = int_to_ptr.vmem [resolvable:$true] %s2600_s29 }
 0x264   :  { %s3415_s30 = scalar_lea.vmem %s2601_s29, 32  ;;  %p3420_p1 = scmp.lt.s32.totalorder %s2601_s29, %s2601_s29 }
 0x265   :  { %v1902_v49 = vadd.f32 %v2776_v47, %v1894_v48  ;;  %p3416_p0 = scmp.ne.s32.totalorder %s2601_s29, %s3415_s30  ;;  %p3421_p2 = scmp.lt.s32.totalorder %s3415_s30, %s3415_s30 }
 0x267   :  { %v1903_v50 = vpack.c.bf16 %v1902_v49, %v1902_v49  ;;  %p3422_p3 = por %p3421_p2, %p3420_p1 }
 0x269   :  { %v1905_v51 = vrot.slane %v1903_v50, 1  ;;  %v1909_v52 = vrot.slane %v1903_v50, 3  ;;  %v1907_v53 = vrot.slane %v1903_v50, 2  ;;  %p3423_p4 = pnand %p3422_p3, %p3416_p0 }
 0x26b   :  { %2199 = vmatprep.mubr.bf16.mxu0 %v1905_v51  ;;  %2239 = vmatprep.mubr.bf16.mxu1 %v1909_v52 }
 0x26c   :  { %2200 = vmatmul.mubr.bf16.vlgmr.msra.gmra.mrb[28].mxu0 %v1903_v50  ;;  %2240 = vmatmul.mubr.bf16.vlgmr.msra.gmra.mrb[28].mxu1 %v1907_v53 }
 0x26d   :  { %2374 = vmatpush1.bf16.msra.mxu0 %v3375_v54  ;;  %2405 = vmatprep.mubr.bf16.mxu0 %v3439_v8  ;;  %v3384_v8 = vld [vmem:[%s4295_s10 + $0x30] ss:$8 sps:$4 sm:$0xff]  }
 0x26e   :  { %2375 = vmatprep.subr.bf16.mxu0 %v3380_v55  ;;  %3108 = vmatpush3.bf16.msra.mxu1 %v3400_v5 }
 0x26f   :  { %3109 = vmatprep.subr.bf16.mxu1 %v3401_v6 }
 0x271   :  { %2376 = vmatpush1.bf16.msra.mxu0 %v3378_v56 }
 0x272   :  { %2377 = vmatprep.subr.bf16.mxu0 %v3383_v57  ;;  %3110 = vmatpush3.bf16.msra.mxu1 %v3402_v7  ;;  %v2827_v57 = vld [vmem:[%s4298_s13] ss:$0 sm:$0xff] }
 0x273   :  { %3111 = vmatprep.subr.bf16.mxu1 %v3403_v9 }
 0x275   :  { %2378 = vmatpush1.bf16.msra.mxu0 %v3381_v58 }
 0x276   :  { %2379 = vmatprep.subr.bf16.mxu0 %v3386_v59  ;;  %3112 = vmatpush3.bf16.msra.mxu1 %v3404_v10 }
 0x277   :  { %3113 = vmatprep.subr.bf16.mxu1 %v3405_v11 }
 0x279   :  { %2380 = vmatpush1.bf16.msra.mxu0 %v3384_v8 }
 0x27a   :  { %2381 = vmatprep.subr.bf16.mxu0 %v3389_v60  ;;  %3114 = vmatpush3.bf16.msra.mxu1 %v3406_v12 }
 0x27b   :  { %3115 = vmatprep.subr.bf16.mxu1 %v3407_v13 }
 0x27d   :  { %2382 = vmatpush1.bf16.msra.mxu0 %v3387_v61 }
 0x27e   :  { %2383 = vmatprep.subr.bf16.mxu0 %v3392_v62  ;;  %3116 = vmatpush3.bf16.msra.mxu1 %v3408_v15 }
 0x27f   :  { %3117 = vmatprep.subr.bf16.mxu1 %v3409_v16 }
 0x281   :  { %2384 = vmatpush1.bf16.msra.mxu0 %v3390_v63 }
 0x282   :  { %2385 = vmatprep.subr.bf16.mxu0 %v3395_v1  ;;  %3118 = vmatpush3.bf16.msra.mxu1 %v3410_v17 }
 0x283   :  { %3119 = vmatprep.subr.bf16.mxu1 %v3411_v34 }
 0x285   :  { %2386 = vmatpush1.bf16.msra.mxu0 %v3393_v0 }
 0x286   :  { %2387 = vmatprep.subr.bf16.mxu0 %v3398_v2  ;;  %3120 = vmatpush3.bf16.msra.mxu1 %v3412_v35 }
 0x287   :  { %3121 = vmatprep.subr.bf16.mxu1 %v3413_v36 }
 0x289   :  { %2388 = vmatpush1.bf16.msra.mxu0 %v3396_v3 }
 0x28a   :  { %3122 = vmatpush3.bf16.msra.mxu1 %v3414_v37 }
 0x33f   :  { %v3079_v18 = vpop.f32.mrb[28].mxu0  ;;  %v3101_v14 = vpop.f32.mrb[28].mxu1 }
 0x340   :  { %v3080_v19 = vpop.f32.mrb[29].mxu0  ;;  %v3102_v20 = vpop.f32.mrb[29].mxu1 }
 0x341   :  { %v3081_v21 = vadd.f32 %v3080_v19, %v3079_v18  ;;  %v3103_v22 = vadd.f32 %v3102_v20, %v3101_v14  ;;  %v3082_v23 = vpop.f32.mrb[30].mxu0  ;;  %v3104_v24 = vpop.f32.mrb[30].mxu1 }
 0x342   :  { %v3083_v25 = vpop.f32.mrb[31].mxu0  ;;  %v3105_v26 = vpop.f32.mrb[31].mxu1 }
 0x343   :  { %v2242_v27 = vadd.f32 %v3103_v22, %v3081_v21 }
 0x345   :  { %v2247_v29 = vmax.f32 %v2242_v27, 0.0 }
 0x347   :  { %v2255_v31 = vmul.f32 %v2809_v28, %v2247_v29 }
 0x349   :  { %v2263_v32 = vadd.f32 %v2810_v30, %v2255_v31 }
 0x34b   :  { %v2264_v33 = vpack.c.bf16 %v2263_v32, %v2263_v32 }
 0x34d   :  { %2406 = vmatmul.mubr.bf16.vlgmr.msra.gmra.mrb[32].mxu0 %v2264_v33 }
 0x420   :  { %v2407_v45 = vpop.f32.mrb[32].mxu0 }
 0x421   :  { %v2408_v46 = vadd.f32 %v2407_v45, %v2286_v43  ;;  %v2409_v47 = vpop.f32.mrb[33].mxu0 }
 0x422   :  { %v2410_v48 = vadd.f32 %v2409_v47, %v2290_v44  ;;  %v2411_v49 = vpop.f32.mrb[34].mxu0 }
 0x423   :  { %v2414_v50 = vmax.f32 %v2408_v46, 0.0  ;;  %v2412_v51 = vpop.f32.mrb[35].mxu0 }
 0x424   :  { %v2415_v52 = vmax.f32 %v2410_v48, 0.0 }
 0x425   :  { %v2416_v54 = vpack.c.bf16 %v2414_v50, %v2414_v50 }
 0x426   :  { %v2417_v53 = vpack.c.bf16 %v2415_v52, %v2415_v52 }
 0x428   :  { %2585 = vmatprep.mubr.bf16.mxu1 %v2417_v53 }
 0x429   :  { %2586 = vmatmul.mubr.bf16.vlgmr.msra.gmra.mrb[32].mxu1 %v2416_v54 }
 0x4fc   :  { %v3123_v55 = vpop.f32.mrb[32].mxu1 }
 0x4fd   :  { %v3124_v56 = vpop.f32.mrb[33].mxu1 }
 0x4fe   :  { %v3125_v58 = vadd.f32 %v3124_v56, %v3123_v55  ;;  %v3126_v59 = vpop.f32.mrb[34].mxu1 }
 0x4ff   :  { %v3127_v8 = vpop.f32.mrb[35].mxu1 }
 0x500   :  { %v2588_v60 = vadd.f32 %v3125_v58, %v2827_v57 }
 0x502   :  { %2593 = vst [vmem:[#allocation2] sm:$0x3] %v2588_v60 }
 0x503   :  { %3426 = shalt.err (!%p3423_p4)
}
 0x504   :  { %s3427_s16 = scalar_lea.hbm %s4299_s14, 32 }
 0x505   :  { %p3428_p5 = scmp.ne.s32.totalorder %s4299_s14, %s3427_s16  ;;  %p3431_p6 = scmp.lt.u32.totalorder %s3427_s16, %s4299_s14 }
 0x507   :  { %p3433_p7 = pnand %p3431_p6, %p3428_p5 }
 0x509   :  { %3436 = shalt.err (!%p3433_p7)
}
 0x50a   :  { %2603 = dma.vmem_to_hbm [thread:$0]  %s2601_s29, 32, %s4299_s14, [#allocation3]  }
 0x50b   :  { %3437 = dma.done.wait [#allocation3], 32  }
 0x50c   :  { %3438 = vsyncadd [#allocation3], 4294967264 }
 0x50d   :  { %2607 = vsyncpa [#allocation3], 1 }

</bundles_post_ra>
